<compile_context>
chip_gen: v7x
topology: tpu7x:2x2x1
jax: 0.10.0
libtpu: 0.0.40
codegen_flags: <defaults>
</compile_context>

<pallas_src>
import functools

import jax
import jax.numpy as jnp
from jax.experimental import pallas as pl
from jax.experimental.pallas import tpu as pltpu


# -----------------------------------------------------------------------------
# Pallas kernel: the full reverse-sampling loop in one invocation.
# Combined trajectory layout: row = b*H + h, col = m*D + d.
# -----------------------------------------------------------------------------
def _ensemble_sample_kernel(
    x_init_ref,    # (B*H, M*D)     VMEM  - initial noise trajectories (combined)
    noise_ref,     # (T, B*H, M*D)  VMEM  - per-step sampling noise (combined)
    w1_ref,        # (M*D, M*Dh)    VMEM  - block-diagonal denoiser layer 1
    w2_ref,        # (M*Dh, M*D)    VMEM  - block-diagonal denoiser layer 2
    temb_ref,      # (T, M*Dh)      VMEM  - time embedding, tiled per model
    cond_mask_ref, # (B*H, M*D)     VMEM  - 1.0 where conditioning pins a cell
    cond_vals_ref, # (B*H, M*D)     VMEM  - loop-invariant conditioning values
    a_x_ref,       # (T,)           SMEM  - pm1*sr + pm2
    a_eps_ref,     # (T,)           SMEM  - pm1*srm1
    sigma_ref,     # (T,)           SMEM  - sqrt(posterior_variance), 0 at t==0
    out_ref,       # (B*H, M*D)     VMEM  - final sample
    *,
    T,
):
    # Loop-invariant values: weights, conditioning mask/values.
    w1 = w1_ref[...]
    w2 = w2_ref[...]
    cond = cond_mask_ref[...] > 0.5
    cond_vals = cond_vals_ref[...]

    # ---- init: x = randn, then hard + cross conditioning (one select) ----
    x0 = jnp.where(cond, cond_vals, x_init_ref[...])

    # ---- DDPM reverse-sampling loop over diffusion steps (x is the carry) ----
    def step(s, x):
        a_x = a_x_ref[s]        # folded posterior-mean coefficient on x
        a_eps = a_eps_ref[s]    # folded posterior-mean coefficient on eps
        sigma = sigma_ref[s]    # noise scale (0 at t == 0)
        te = temb_ref[pl.ds(s, 1), :]                  # (1, M*Dh)

        # Fused per-model denoiser (block-diagonal weights => one matmul pair).
        hid = jnp.tanh(
            jnp.dot(x, w1, preferred_element_type=jnp.float32,
                    precision=jax.lax.Precision.DEFAULT) + te
        )
        eps = jnp.dot(hid, w2, preferred_element_type=jnp.float32,
                      precision=jax.lax.Precision.DEFAULT)

        # mean = pm1*(sr*x - srm1*eps) + pm2*x  ==  a_x*x - a_eps*eps
        x_new = a_x * x - a_eps * eps + sigma * noise_ref[s]

        # apply_hard_conditioning + apply_cross_conditioning in one vsel.
        return jnp.where(cond, cond_vals, x_new)

    x_final = jax.lax.fori_loop(0, T, step, x0, unroll=True)
    out_ref[...] = x_final


# -----------------------------------------------------------------------------
# Wrapper: layout plumbing (combined lane layout, block-diagonal weights,
# loop-invariant conditioning slab, folded DDPM coefficients).
# -----------------------------------------------------------------------------
def diffusion_ensemble_p_sample_loop(
    x_init, noise, w1, w2, temb, start, goal, transforms, coeffs
):
    M, B, H, D = x_init.shape
    T = noise.shape[0]
    Dh = w1.shape[-1]
    MD, MDh = M * D, M * Dh

    # Combined layout: row = b*H + h, col = m*D + d (done outside the kernel).
    x_init_c = jnp.transpose(x_init, (1, 2, 0, 3)).reshape(B * H, MD)
    noise_c = jnp.transpose(noise, (0, 2, 3, 1, 4)).reshape(T, B * H, MD)
    start_c = jnp.transpose(start, (1, 0, 2)).reshape(B, MD)
    goal_c = jnp.transpose(goal, (1, 0, 2)).reshape(B, MD)
    temb_c = jnp.tile(temb[:, 0, :], (1, M))                      # (T, M*Dh)
    delta = (transforms[0, 0, :2] - transforms[1, 0, :2]).reshape(2)

    # Loop-invariant conditioning slab (hard + cross in one mask/values pair):
    #  * rows b*H       -> start state (all models), with model-1 cols D:D+2
    #                      overridden by the cross condition
    #                      (= model-0 goal positions + frame delta),
    #  * rows b*H + H-1 -> goal state (all models).
    # The cross source is the just-pinned goal row, so everything is constant.
    cond_mask = jnp.zeros((B * H, MD), jnp.float32)
    cond_vals = jnp.zeros((B * H, MD), jnp.float32)
    for b in range(B):
        r0 = b * H
        r1 = b * H + H - 1
        cond_mask = cond_mask.at[r0, :].set(1.0).at[r1, :].set(1.0)
        cond_vals = cond_vals.at[r0, :].set(start_c[b]).at[r1, :].set(goal_c[b])
        cond_vals = cond_vals.at[r0, D:D + 2].set(goal_c[b, 0:2] + delta)

    # Block-diagonal fused denoiser weights.
    # TODO(synk): MXU work grows O(M^2) with this fusion; switch to per-model
    # matmuls once M*D approaches a full MXU tile.
    w1_blk = jnp.zeros((MD, MDh), jnp.float32)
    w2_blk = jnp.zeros((MDh, MD), jnp.float32)
    for m in range(M):
        w1_blk = w1_blk.at[m * D:(m + 1) * D, m * Dh:(m + 1) * Dh].set(w1[m])
        w2_blk = w2_blk.at[m * Dh:(m + 1) * Dh, m * D:(m + 1) * D].set(w2[m])

    # Folded DDPM coefficients: mean = (pm1*sr + pm2)*x - (pm1*srm1)*eps.
    sr, srm1, pm1, pm2, sigma = (coeffs[:, j] for j in range(5))
    a_x = (pm1 * sr + pm2).astype(jnp.float32)        # (T,)
    a_eps = (pm1 * srm1).astype(jnp.float32)          # (T,)
    sigma = sigma.astype(jnp.float32)                 # (T,)

    kernel = functools.partial(_ensemble_sample_kernel, T=T)

    vmem = lambda: pl.BlockSpec(memory_space=pltpu.MemorySpace.VMEM)
    smem = lambda: pl.BlockSpec(memory_space=pltpu.MemorySpace.SMEM)

    out_c = pl.pallas_call(
        kernel,
        out_shape=jax.ShapeDtypeStruct((B * H, MD), jnp.float32),
        in_specs=[
            vmem(),  # x_init_c
            vmem(),  # noise_c
            vmem(),  # w1_blk
            vmem(),  # w2_blk
            vmem(),  # temb_c
            vmem(),  # cond_mask
            vmem(),  # cond_vals
            smem(),  # a_x
            smem(),  # a_eps
            smem(),  # sigma
        ],
        out_specs=vmem(),
    )(x_init_c, noise_c, w1_blk, w2_blk, temb_c, cond_mask, cond_vals,
      a_x, a_eps, sigma)

    # Back to (M, B, H, D).
    return jnp.transpose(out_c.reshape(B, H, M, D), (2, 0, 1, 3))


# -----------------------------------------------------------------------------
# Pure-JAX reference (defines the exact semantics the kernel must match)
# -----------------------------------------------------------------------------
def reference_p_sample_loop(x_init, noise, w1, w2, temb, start, goal, trans, coeffs):
    M, B, H, D = x_init.shape
    T = coeffs.shape[0]

    def hard(xm, m):
        xm = xm.at[:, 0, :].set(start[m])
        xm = xm.at[:, H - 1, :].set(goal[m])
        return xm

    def cross(xs):
        delta = (trans[0, 0] - trans[1, 0])[:2]
        target = xs[0][:, H - 1, :2] + delta
        xs[1] = xs[1].at[:, 0, :2].set(target)
        return xs

    xs = [hard(x_init[m], m) for m in range(M)]
    xs = cross(xs)

    for s in range(T):
        c_sr, c_srm1, c_pm1, c_pm2, sig = [coeffs[s, j] for j in range(5)]
        te = temb[s, 0]
        for m in range(M):
            xm = xs[m]
            hid = jnp.tanh(xm.reshape(B * H, D) @ w1[m] + te)
            eps = (hid @ w2[m]).reshape(B, H, D)
            x_recon = c_sr * xm - c_srm1 * eps
            mean = c_pm1 * x_recon + c_pm2 * xm
            x_new = mean + sig * noise[s, m]
            xs[m] = hard(x_new, m)
        xs = cross(xs)
    return jnp.stack(xs)


# -----------------------------------------------------------------------------
# Deterministic setup + run
# -----------------------------------------------------------------------------
if __name__ == "__main__":
    M, B, H, D, Dh, T = 2, 2, 16, 8, 32, 8  # models, batch, horizon, state_dim

    key = jax.random.PRNGKey(0)
    k = jax.random.split(key, 8)

    x_init = jax.random.normal(k[0], (M, B, H, D), dtype=jnp.float32)
    noise = jax.random.normal(k[1], (T, M, B, H, D), dtype=jnp.float32)
    w1 = 0.1 * jax.random.normal(k[2], (M, D, Dh), dtype=jnp.float32)
    w2 = 0.1 * jax.random.normal(k[3], (M, Dh, D), dtype=jnp.float32)
    temb = 0.1 * jax.random.normal(k[4], (T, 1, Dh), dtype=jnp.float32)
    start = jax.random.normal(k[5], (M, B, D), dtype=jnp.float32)
    goal = jax.random.normal(k[6], (M, B, D), dtype=jnp.float32)
    transforms = jax.random.normal(k[7], (M, 1, D), dtype=jnp.float32)

    # GaussianDiffusion schedule coefficients (linear betas); step s uses t = T-1-s.
    betas = jnp.linspace(1e-4, 2e-2, T, dtype=jnp.float32)
    alphas = 1.0 - betas
    acp = jnp.cumprod(alphas)
    acp_prev = jnp.concatenate([jnp.ones((1,), jnp.float32), acp[:-1]])
    sr = 1.0 / jnp.sqrt(acp)
    srm1 = jnp.sqrt(1.0 / acp - 1.0)
    pvar = betas * (1.0 - acp_prev) / (1.0 - acp)
    pm1 = betas * jnp.sqrt(acp_prev) / (1.0 - acp)
    pm2 = (1.0 - acp_prev) * jnp.sqrt(alphas) / (1.0 - acp)
    sigma = jnp.sqrt(pvar).at[0].set(0.0)  # no noise at t == 0
    coeffs = jnp.stack([sr, srm1, pm1, pm2, sigma], axis=1)[::-1]  # (T, 5)
    coeffs = jnp.asarray(coeffs, dtype=jnp.float32)

    out = diffusion_ensemble_p_sample_loop(
        x_init, noise, w1, w2, temb, start, goal, transforms, coeffs
    )
    out = jax.block_until_ready(out)

    ref = reference_p_sample_loop(
        x_init, noise, w1, w2, temb, start, goal, transforms, coeffs
    )
    ref = jax.block_until_ready(ref)

    assert out.shape == (M, B, H, D)
    assert jnp.allclose(out, ref, atol=1e-4, rtol=1e-4), (
        float(jnp.max(jnp.abs(out - ref)))
    )
    print("KERNEL_OK")
</pallas_src>

<mosaic_0001>
module attributes {stable_mosaic.version = 11 : i64} {
  func.func @_ensemble_sample_kernel(%arg0: memref<32x16xf32, #tpu.memory_space<vmem>>, %arg1: memref<8x32x16xf32, #tpu.memory_space<vmem>>, %arg2: memref<16x64xf32, #tpu.memory_space<vmem>>, %arg3: memref<64x16xf32, #tpu.memory_space<vmem>>, %arg4: memref<8x64xf32, #tpu.memory_space<vmem>>, %arg5: memref<32x16xf32, #tpu.memory_space<vmem>>, %arg6: memref<32x16xf32, #tpu.memory_space<vmem>>, %arg7: memref<8xf32, #tpu.memory_space<smem>>, %arg8: memref<8xf32, #tpu.memory_space<smem>>, %arg9: memref<8xf32, #tpu.memory_space<smem>>, %arg10: memref<32x16xf32, #tpu.memory_space<vmem>>) attributes {dimension_semantics = [], scalar_prefetch = 0 : i64, scratch_operands = 0 : i64, tpu.core_type = #tpu.core_type<tc>} {
    %c0 = arith.constant 0 : index
    %c0_0 = arith.constant 0 : index
    %0 = vector.load %arg2[%c0, %c0_0] : memref<16x64xf32, #tpu.memory_space<vmem>>, vector<16x64xf32>
    %c0_1 = arith.constant 0 : index
    %c0_2 = arith.constant 0 : index
    %1 = vector.load %arg3[%c0_1, %c0_2] : memref<64x16xf32, #tpu.memory_space<vmem>>, vector<64x16xf32>
    %c0_3 = arith.constant 0 : index
    %c0_4 = arith.constant 0 : index
    %2 = vector.load %arg5[%c0_3, %c0_4] : memref<32x16xf32, #tpu.memory_space<vmem>>, vector<32x16xf32>
    %cst = arith.constant 5.000000e-01 : f32
    %3 = vector.broadcast %cst : f32 to vector<32x16xf32>
    %4 = arith.cmpf ogt, %2, %3 : vector<32x16xf32>
    %c0_5 = arith.constant 0 : index
    %c0_6 = arith.constant 0 : index
    %5 = vector.load %arg6[%c0_5, %c0_6] : memref<32x16xf32, #tpu.memory_space<vmem>>, vector<32x16xf32>
    %c0_7 = arith.constant 0 : index
    %c0_8 = arith.constant 0 : index
    %6 = vector.load %arg0[%c0_7, %c0_8] : memref<32x16xf32, #tpu.memory_space<vmem>>, vector<32x16xf32>
    %7 = arith.select %4, %5, %6 : vector<32x16xi1>, vector<32x16xf32>
    %c0_i32 = arith.constant 0 : i32
    %8 = arith.index_cast %c0_i32 : i32 to index
    %9 = memref.load %arg7[%8] : memref<8xf32, #tpu.memory_space<smem>>
    %10 = arith.index_cast %c0_i32 : i32 to index
    %11 = memref.load %arg8[%10] : memref<8xf32, #tpu.memory_space<smem>>
    %12 = arith.index_cast %c0_i32 : i32 to index
    %13 = memref.load %arg9[%12] : memref<8xf32, #tpu.memory_space<smem>>
    %14 = arith.index_cast %c0_i32 : i32 to index
    %c0_9 = arith.constant 0 : index
    %15 = vector.load %arg4[%14, %c0_9] : memref<8x64xf32, #tpu.memory_space<vmem>>, vector<1x64xf32>
    %cst_10 = arith.constant dense<0.000000e+00> : vector<32x64xf32>
    %16 = tpu.matmul %7, %0, %cst_10 {dimension_numbers = #tpu.dot_dimension_numbers<[1], [0], [0], [1], [0, 0, 1, 1], [], []>} : vector<32x16xf32>, vector<16x64xf32>, vector<32x64xf32> -> vector<32x64xf32>
    %17 = vector.broadcast %15 : vector<1x64xf32> to vector<32x64xf32>
    %18 = arith.addf %16, %17 : vector<32x64xf32>
    %19 = math.tanh %18 : vector<32x64xf32>
    %cst_11 = arith.constant dense<0.000000e+00> : vector<32x16xf32>
    %20 = tpu.matmul %19, %1, %cst_11 {dimension_numbers = #tpu.dot_dimension_numbers<[1], [0], [0], [1], [0, 0, 1, 1], [], []>} : vector<32x64xf32>, vector<64x16xf32>, vector<32x16xf32> -> vector<32x16xf32>
    %21 = vector.broadcast %9 : f32 to vector<32x16xf32>
    %22 = arith.mulf %21, %7 : vector<32x16xf32>
    %23 = vector.broadcast %11 : f32 to vector<32x16xf32>
    %24 = arith.mulf %23, %20 : vector<32x16xf32>
    %25 = arith.subf %22, %24 : vector<32x16xf32>
    %26 = arith.index_cast %c0_i32 : i32 to index
    %c0_12 = arith.constant 0 : index
    %c0_13 = arith.constant 0 : index
    %27 = vector.load %arg1[%26, %c0_12, %c0_13] : memref<8x32x16xf32, #tpu.memory_space<vmem>>, vector<1x32x16xf32>
    %28 = vector.shape_cast %27 : vector<1x32x16xf32> to vector<32x16xf32>
    %29 = vector.broadcast %13 : f32 to vector<32x16xf32>
    %30 = arith.mulf %29, %28 : vector<32x16xf32>
    %31 = arith.addf %25, %30 : vector<32x16xf32>
    %32 = arith.select %4, %5, %31 : vector<32x16xi1>, vector<32x16xf32>
    %c1_i32 = arith.constant 1 : i32
    %33 = arith.index_cast %c1_i32 : i32 to index
    %34 = memref.load %arg7[%33] : memref<8xf32, #tpu.memory_space<smem>>
    %35 = arith.index_cast %c1_i32 : i32 to index
    %36 = memref.load %arg8[%35] : memref<8xf32, #tpu.memory_space<smem>>
    %37 = arith.index_cast %c1_i32 : i32 to index
    %38 = memref.load %arg9[%37] : memref<8xf32, #tpu.memory_space<smem>>
    %39 = arith.index_cast %c1_i32 : i32 to index
    %c0_14 = arith.constant 0 : index
    %40 = vector.load %arg4[%39, %c0_14] : memref<8x64xf32, #tpu.memory_space<vmem>>, vector<1x64xf32>
    %cst_15 = arith.constant dense<0.000000e+00> : vector<32x64xf32>
    %41 = tpu.matmul %32, %0, %cst_15 {dimension_numbers = #tpu.dot_dimension_numbers<[1], [0], [0], [1], [0, 0, 1, 1], [], []>} : vector<32x16xf32>, vector<16x64xf32>, vector<32x64xf32> -> vector<32x64xf32>
    %42 = vector.broadcast %40 : vector<1x64xf32> to vector<32x64xf32>
    %43 = arith.addf %41, %42 : vector<32x64xf32>
    %44 = math.tanh %43 : vector<32x64xf32>
    %cst_16 = arith.constant dense<0.000000e+00> : vector<32x16xf32>
    %45 = tpu.matmul %44, %1, %cst_16 {dimension_numbers = #tpu.dot_dimension_numbers<[1], [0], [0], [1], [0, 0, 1, 1], [], []>} : vector<32x64xf32>, vector<64x16xf32>, vector<32x16xf32> -> vector<32x16xf32>
    %46 = vector.broadcast %34 : f32 to vector<32x16xf32>
    %47 = arith.mulf %46, %32 : vector<32x16xf32>
    %48 = vector.broadcast %36 : f32 to vector<32x16xf32>
    %49 = arith.mulf %48, %45 : vector<32x16xf32>
    %50 = arith.subf %47, %49 : vector<32x16xf32>
    %51 = arith.index_cast %c1_i32 : i32 to index
    %c0_17 = arith.constant 0 : index
    %c0_18 = arith.constant 0 : index
    %52 = vector.load %arg1[%51, %c0_17, %c0_18] : memref<8x32x16xf32, #tpu.memory_space<vmem>>, vector<1x32x16xf32>
    %53 = vector.shape_cast %52 : vector<1x32x16xf32> to vector<32x16xf32>
    %54 = vector.broadcast %38 : f32 to vector<32x16xf32>
    %55 = arith.mulf %54, %53 : vector<32x16xf32>
    %56 = arith.addf %50, %55 : vector<32x16xf32>
    %57 = arith.select %4, %5, %56 : vector<32x16xi1>, vector<32x16xf32>
    %c2_i32 = arith.constant 2 : i32
    %58 = arith.index_cast %c2_i32 : i32 to index
    %59 = memref.load %arg7[%58] : memref<8xf32, #tpu.memory_space<smem>>
    %60 = arith.index_cast %c2_i32 : i32 to index
    %61 = memref.load %arg8[%60] : memref<8xf32, #tpu.memory_space<smem>>
    %62 = arith.index_cast %c2_i32 : i32 to index
    %63 = memref.load %arg9[%62] : memref<8xf32, #tpu.memory_space<smem>>
    %64 = arith.index_cast %c2_i32 : i32 to index
    %c0_19 = arith.constant 0 : index
    %65 = vector.load %arg4[%64, %c0_19] : memref<8x64xf32, #tpu.memory_space<vmem>>, vector<1x64xf32>
    %cst_20 = arith.constant dense<0.000000e+00> : vector<32x64xf32>
    %66 = tpu.matmul %57, %0, %cst_20 {dimension_numbers = #tpu.dot_dimension_numbers<[1], [0], [0], [1], [0, 0, 1, 1], [], []>} : vector<32x16xf32>, vector<16x64xf32>, vector<32x64xf32> -> vector<32x64xf32>
    %67 = vector.broadcast %65 : vector<1x64xf32> to vector<32x64xf32>
    %68 = arith.addf %66, %67 : vector<32x64xf32>
    %69 = math.tanh %68 : vector<32x64xf32>
    %cst_21 = arith.constant dense<0.000000e+00> : vector<32x16xf32>
    %70 = tpu.matmul %69, %1, %cst_21 {dimension_numbers = #tpu.dot_dimension_numbers<[1], [0], [0], [1], [0, 0, 1, 1], [], []>} : vector<32x64xf32>, vector<64x16xf32>, vector<32x16xf32> -> vector<32x16xf32>
    %71 = vector.broadcast %59 : f32 to vector<32x16xf32>
    %72 = arith.mulf %71, %57 : vector<32x16xf32>
    %73 = vector.broadcast %61 : f32 to vector<32x16xf32>
    %74 = arith.mulf %73, %70 : vector<32x16xf32>
    %75 = arith.subf %72, %74 : vector<32x16xf32>
    %76 = arith.index_cast %c2_i32 : i32 to index
    %c0_22 = arith.constant 0 : index
    %c0_23 = arith.constant 0 : index
    %77 = vector.load %arg1[%76, %c0_22, %c0_23] : memref<8x32x16xf32, #tpu.memory_space<vmem>>, vector<1x32x16xf32>
    %78 = vector.shape_cast %77 : vector<1x32x16xf32> to vector<32x16xf32>
    %79 = vector.broadcast %63 : f32 to vector<32x16xf32>
    %80 = arith.mulf %79, %78 : vector<32x16xf32>
    %81 = arith.addf %75, %80 : vector<32x16xf32>
    %82 = arith.select %4, %5, %81 : vector<32x16xi1>, vector<32x16xf32>
    %c3_i32 = arith.constant 3 : i32
    %83 = arith.index_cast %c3_i32 : i32 to index
    %84 = memref.load %arg7[%83] : memref<8xf32, #tpu.memory_space<smem>>
    %85 = arith.index_cast %c3_i32 : i32 to index
    %86 = memref.load %arg8[%85] : memref<8xf32, #tpu.memory_space<smem>>
    %87 = arith.index_cast %c3_i32 : i32 to index
    %88 = memref.load %arg9[%87] : memref<8xf32, #tpu.memory_space<smem>>
    %89 = arith.index_cast %c3_i32 : i32 to index
    %c0_24 = arith.constant 0 : index
    %90 = vector.load %arg4[%89, %c0_24] : memref<8x64xf32, #tpu.memory_space<vmem>>, vector<1x64xf32>
    %cst_25 = arith.constant dense<0.000000e+00> : vector<32x64xf32>
    %91 = tpu.matmul %82, %0, %cst_25 {dimension_numbers = #tpu.dot_dimension_numbers<[1], [0], [0], [1], [0, 0, 1, 1], [], []>} : vector<32x16xf32>, vector<16x64xf32>, vector<32x64xf32> -> vector<32x64xf32>
    %92 = vector.broadcast %90 : vector<1x64xf32> to vector<32x64xf32>
    %93 = arith.addf %91, %92 : vector<32x64xf32>
    %94 = math.tanh %93 : vector<32x64xf32>
    %cst_26 = arith.constant dense<0.000000e+00> : vector<32x16xf32>
    %95 = tpu.matmul %94, %1, %cst_26 {dimension_numbers = #tpu.dot_dimension_numbers<[1], [0], [0], [1], [0, 0, 1, 1], [], []>} : vector<32x64xf32>, vector<64x16xf32>, vector<32x16xf32> -> vector<32x16xf32>
    %96 = vector.broadcast %84 : f32 to vector<32x16xf32>
    %97 = arith.mulf %96, %82 : vector<32x16xf32>
    %98 = vector.broadcast %86 : f32 to vector<32x16xf32>
    %99 = arith.mulf %98, %95 : vector<32x16xf32>
    %100 = arith.subf %97, %99 : vector<32x16xf32>
    %101 = arith.index_cast %c3_i32 : i32 to index
    %c0_27 = arith.constant 0 : index
    %c0_28 = arith.constant 0 : index
    %102 = vector.load %arg1[%101, %c0_27, %c0_28] : memref<8x32x16xf32, #tpu.memory_space<vmem>>, vector<1x32x16xf32>
    %103 = vector.shape_cast %102 : vector<1x32x16xf32> to vector<32x16xf32>
    %104 = vector.broadcast %88 : f32 to vector<32x16xf32>
    %105 = arith.mulf %104, %103 : vector<32x16xf32>
    %106 = arith.addf %100, %105 : vector<32x16xf32>
    %107 = arith.select %4, %5, %106 : vector<32x16xi1>, vector<32x16xf32>
    %c4_i32 = arith.constant 4 : i32
    %108 = arith.index_cast %c4_i32 : i32 to index
    %109 = memref.load %arg7[%108] : memref<8xf32, #tpu.memory_space<smem>>
    %110 = arith.index_cast %c4_i32 : i32 to index
    %111 = memref.load %arg8[%110] : memref<8xf32, #tpu.memory_space<smem>>
    %112 = arith.index_cast %c4_i32 : i32 to index
    %113 = memref.load %arg9[%112] : memref<8xf32, #tpu.memory_space<smem>>
    %114 = arith.index_cast %c4_i32 : i32 to index
    %c0_29 = arith.constant 0 : index
    %115 = vector.load %arg4[%114, %c0_29] : memref<8x64xf32, #tpu.memory_space<vmem>>, vector<1x64xf32>
    %cst_30 = arith.constant dense<0.000000e+00> : vector<32x64xf32>
    %116 = tpu.matmul %107, %0, %cst_30 {dimension_numbers = #tpu.dot_dimension_numbers<[1], [0], [0], [1], [0, 0, 1, 1], [], []>} : vector<32x16xf32>, vector<16x64xf32>, vector<32x64xf32> -> vector<32x64xf32>
    %117 = vector.broadcast %115 : vector<1x64xf32> to vector<32x64xf32>
    %118 = arith.addf %116, %117 : vector<32x64xf32>
    %119 = math.tanh %118 : vector<32x64xf32>
    %cst_31 = arith.constant dense<0.000000e+00> : vector<32x16xf32>
    %120 = tpu.matmul %119, %1, %cst_31 {dimension_numbers = #tpu.dot_dimension_numbers<[1], [0], [0], [1], [0, 0, 1, 1], [], []>} : vector<32x64xf32>, vector<64x16xf32>, vector<32x16xf32> -> vector<32x16xf32>
    %121 = vector.broadcast %109 : f32 to vector<32x16xf32>
    %122 = arith.mulf %121, %107 : vector<32x16xf32>
    %123 = vector.broadcast %111 : f32 to vector<32x16xf32>
    %124 = arith.mulf %123, %120 : vector<32x16xf32>
    %125 = arith.subf %122, %124 : vector<32x16xf32>
    %126 = arith.index_cast %c4_i32 : i32 to index
    %c0_32 = arith.constant 0 : index
    %c0_33 = arith.constant 0 : index
    %127 = vector.load %arg1[%126, %c0_32, %c0_33] : memref<8x32x16xf32, #tpu.memory_space<vmem>>, vector<1x32x16xf32>
    %128 = vector.shape_cast %127 : vector<1x32x16xf32> to vector<32x16xf32>
    %129 = vector.broadcast %113 : f32 to vector<32x16xf32>
    %130 = arith.mulf %129, %128 : vector<32x16xf32>
    %131 = arith.addf %125, %130 : vector<32x16xf32>
    %132 = arith.select %4, %5, %131 : vector<32x16xi1>, vector<32x16xf32>
    %c5_i32 = arith.constant 5 : i32
    %133 = arith.index_cast %c5_i32 : i32 to index
    %134 = memref.load %arg7[%133] : memref<8xf32, #tpu.memory_space<smem>>
    %135 = arith.index_cast %c5_i32 : i32 to index
    %136 = memref.load %arg8[%135] : memref<8xf32, #tpu.memory_space<smem>>
    %137 = arith.index_cast %c5_i32 : i32 to index
    %138 = memref.load %arg9[%137] : memref<8xf32, #tpu.memory_space<smem>>
    %139 = arith.index_cast %c5_i32 : i32 to index
    %c0_34 = arith.constant 0 : index
    %140 = vector.load %arg4[%139, %c0_34] : memref<8x64xf32, #tpu.memory_space<vmem>>, vector<1x64xf32>
    %cst_35 = arith.constant dense<0.000000e+00> : vector<32x64xf32>
    %141 = tpu.matmul %132, %0, %cst_35 {dimension_numbers = #tpu.dot_dimension_numbers<[1], [0], [0], [1], [0, 0, 1, 1], [], []>} : vector<32x16xf32>, vector<16x64xf32>, vector<32x64xf32> -> vector<32x64xf32>
    %142 = vector.broadcast %140 : vector<1x64xf32> to vector<32x64xf32>
    %143 = arith.addf %141, %142 : vector<32x64xf32>
    %144 = math.tanh %143 : vector<32x64xf32>
    %cst_36 = arith.constant dense<0.000000e+00> : vector<32x16xf32>
    %145 = tpu.matmul %144, %1, %cst_36 {dimension_numbers = #tpu.dot_dimension_numbers<[1], [0], [0], [1], [0, 0, 1, 1], [], []>} : vector<32x64xf32>, vector<64x16xf32>, vector<32x16xf32> -> vector<32x16xf32>
    %146 = vector.broadcast %134 : f32 to vector<32x16xf32>
    %147 = arith.mulf %146, %132 : vector<32x16xf32>
    %148 = vector.broadcast %136 : f32 to vector<32x16xf32>
    %149 = arith.mulf %148, %145 : vector<32x16xf32>
    %150 = arith.subf %147, %149 : vector<32x16xf32>
    %151 = arith.index_cast %c5_i32 : i32 to index
    %c0_37 = arith.constant 0 : index
    %c0_38 = arith.constant 0 : index
    %152 = vector.load %arg1[%151, %c0_37, %c0_38] : memref<8x32x16xf32, #tpu.memory_space<vmem>>, vector<1x32x16xf32>
    %153 = vector.shape_cast %152 : vector<1x32x16xf32> to vector<32x16xf32>
    %154 = vector.broadcast %138 : f32 to vector<32x16xf32>
    %155 = arith.mulf %154, %153 : vector<32x16xf32>
    %156 = arith.addf %150, %155 : vector<32x16xf32>
    %157 = arith.select %4, %5, %156 : vector<32x16xi1>, vector<32x16xf32>
    %c6_i32 = arith.constant 6 : i32
    %158 = arith.index_cast %c6_i32 : i32 to index
    %159 = memref.load %arg7[%158] : memref<8xf32, #tpu.memory_space<smem>>
    %160 = arith.index_cast %c6_i32 : i32 to index
    %161 = memref.load %arg8[%160] : memref<8xf32, #tpu.memory_space<smem>>
    %162 = arith.index_cast %c6_i32 : i32 to index
    %163 = memref.load %arg9[%162] : memref<8xf32, #tpu.memory_space<smem>>
    %164 = arith.index_cast %c6_i32 : i32 to index
    %c0_39 = arith.constant 0 : index
    %165 = vector.load %arg4[%164, %c0_39] : memref<8x64xf32, #tpu.memory_space<vmem>>, vector<1x64xf32>
    %cst_40 = arith.constant dense<0.000000e+00> : vector<32x64xf32>
    %166 = tpu.matmul %157, %0, %cst_40 {dimension_numbers = #tpu.dot_dimension_numbers<[1], [0], [0], [1], [0, 0, 1, 1], [], []>} : vector<32x16xf32>, vector<16x64xf32>, vector<32x64xf32> -> vector<32x64xf32>
    %167 = vector.broadcast %165 : vector<1x64xf32> to vector<32x64xf32>
    %168 = arith.addf %166, %167 : vector<32x64xf32>
    %169 = math.tanh %168 : vector<32x64xf32>
    %cst_41 = arith.constant dense<0.000000e+00> : vector<32x16xf32>
    %170 = tpu.matmul %169, %1, %cst_41 {dimension_numbers = #tpu.dot_dimension_numbers<[1], [0], [0], [1], [0, 0, 1, 1], [], []>} : vector<32x64xf32>, vector<64x16xf32>, vector<32x16xf32> -> vector<32x16xf32>
    %171 = vector.broadcast %159 : f32 to vector<32x16xf32>
    %172 = arith.mulf %171, %157 : vector<32x16xf32>
    %173 = vector.broadcast %161 : f32 to vector<32x16xf32>
    %174 = arith.mulf %173, %170 : vector<32x16xf32>
    %175 = arith.subf %172, %174 : vector<32x16xf32>
    %176 = arith.index_cast %c6_i32 : i32 to index
    %c0_42 = arith.constant 0 : index
    %c0_43 = arith.constant 0 : index
    %177 = vector.load %arg1[%176, %c0_42, %c0_43] : memref<8x32x16xf32, #tpu.memory_space<vmem>>, vector<1x32x16xf32>
    %178 = vector.shape_cast %177 : vector<1x32x16xf32> to vector<32x16xf32>
    %179 = vector.broadcast %163 : f32 to vector<32x16xf32>
    %180 = arith.mulf %179, %178 : vector<32x16xf32>
    %181 = arith.addf %175, %180 : vector<32x16xf32>
    %182 = arith.select %4, %5, %181 : vector<32x16xi1>, vector<32x16xf32>
    %c7_i32 = arith.constant 7 : i32
    %183 = arith.index_cast %c7_i32 : i32 to index
    %184 = memref.load %arg7[%183] : memref<8xf32, #tpu.memory_space<smem>>
    %185 = arith.index_cast %c7_i32 : i32 to index
    %186 = memref.load %arg8[%185] : memref<8xf32, #tpu.memory_space<smem>>
    %187 = arith.index_cast %c7_i32 : i32 to index
    %188 = memref.load %arg9[%187] : memref<8xf32, #tpu.memory_space<smem>>
    %189 = arith.index_cast %c7_i32 : i32 to index
    %c0_44 = arith.constant 0 : index
    %190 = vector.load %arg4[%189, %c0_44] : memref<8x64xf32, #tpu.memory_space<vmem>>, vector<1x64xf32>
    %cst_45 = arith.constant dense<0.000000e+00> : vector<32x64xf32>
    %191 = tpu.matmul %182, %0, %cst_45 {dimension_numbers = #tpu.dot_dimension_numbers<[1], [0], [0], [1], [0, 0, 1, 1], [], []>} : vector<32x16xf32>, vector<16x64xf32>, vector<32x64xf32> -> vector<32x64xf32>
    %192 = vector.broadcast %190 : vector<1x64xf32> to vector<32x64xf32>
    %193 = arith.addf %191, %192 : vector<32x64xf32>
    %194 = math.tanh %193 : vector<32x64xf32>
    %cst_46 = arith.constant dense<0.000000e+00> : vector<32x16xf32>
    %195 = tpu.matmul %194, %1, %cst_46 {dimension_numbers = #tpu.dot_dimension_numbers<[1], [0], [0], [1], [0, 0, 1, 1], [], []>} : vector<32x64xf32>, vector<64x16xf32>, vector<32x16xf32> -> vector<32x16xf32>
    %196 = vector.broadcast %184 : f32 to vector<32x16xf32>
    %197 = arith.mulf %196, %182 : vector<32x16xf32>
    %198 = vector.broadcast %186 : f32 to vector<32x16xf32>
    %199 = arith.mulf %198, %195 : vector<32x16xf32>
    %200 = arith.subf %197, %199 : vector<32x16xf32>
    %201 = arith.index_cast %c7_i32 : i32 to index
    %c0_47 = arith.constant 0 : index
    %c0_48 = arith.constant 0 : index
    %202 = vector.load %arg1[%201, %c0_47, %c0_48] : memref<8x32x16xf32, #tpu.memory_space<vmem>>, vector<1x32x16xf32>
    %203 = vector.shape_cast %202 : vector<1x32x16xf32> to vector<32x16xf32>
    %204 = vector.broadcast %188 : f32 to vector<32x16xf32>
    %205 = arith.mulf %204, %203 : vector<32x16xf32>
    %206 = arith.addf %200, %205 : vector<32x16xf32>
    %207 = arith.select %4, %5, %206 : vector<32x16xi1>, vector<32x16xf32>
    %c8_i32 = arith.constant 8 : i32
    %c0_49 = arith.constant 0 : index
    %c0_50 = arith.constant 0 : index
    %208 = vector.load %arg10[%c0_49, %c0_50] : memref<32x16xf32, #tpu.memory_space<vmem>>, vector<32x16xf32>
    tpu.vector_store %arg10[%c0_49, %c0_50], %207 {strides = array<i32>} : memref<32x16xf32, #tpu.memory_space<vmem>>, vector<32x16xf32>,
    return
  }
}

</mosaic_0001>

<bundles_post_ra>
// kernel: tpu_custom_call.1
= control target key start
LH: loop header
LB: loop body
LE: loop exit
PB: predicated region body
PF: predicated region fallthrough
CT: control target
= control target key end

     0   :  { %15 = vsyncpa [#allocation3], 0  ;;  %s3395_s0 = inlined_call_operand.vmem [shape: f32[32,16], index: 0, kind: input, shape index: {}]   ;;  %s3396_s1 = inlined_call_operand.vmem [shape: f32[8,32,16], index: 1, kind: input, shape index: {}]   ;;  %s3397_s2 = inlined_call_operand.vmem [shape: f32[16,64], index: 2, kind: input, shape index: {}]   ;;  %s3398_s3 = inlined_call_operand.vmem [shape: f32[64,16], index: 3, kind: input, shape index: {}]   ;;  %s3399_s4 = inlined_call_operand.vmem [shape: f32[8,64], index: 4, kind: input, shape index: {}]   ;;  %s3400_s5 = inlined_call_operand.vmem [shape: f32[32,16], index: 5, kind: input, shape index: {}]   ;;  %s3401_s6 = inlined_call_operand.vmem [shape: f32[32,16], index: 6, kind: input, shape index: {}]   ;;  %s3402_s7 = inlined_call_operand.vmem [shape: f32[8], index: 7, kind: input, shape index: {}]   ;;  %s3403_s8 = inlined_call_operand.vmem [shape: f32[8], index: 8, kind: input, shape index: {}]   ;;  %s3404_s9 = inlined_call_operand.vmem [shape: f32[8], index: 9, kind: input, shape index: {}]   ;;  %s3405_s10 = inlined_call_operand.vmem [shape: f32[32,16], index: 10, kind: output, shape index: {}]  }
   0x1   :  { %16 = vsyncpa [#allocation5], 0  ;;  %s47_s15 = sshll.u32 %s3403_s8, 4  ;;  %s37_s18 = sshll.u32 %s3402_s7, 4  ;;  %s48_s15 = int_to_ptr.vmem [resolvable:$true] %s47_s15  ;;  %s38_s18 = int_to_ptr.vmem [resolvable:$true] %s37_s18 }
   0x2   :  { %s2768_s19 = scalar_lea.vmem %s48_s15, 16  ;;  %p2773_p1 = scmp.lt.s32.totalorder %s48_s15, %s48_s15 }
   0x3   :  { %p2769_p0 = scmp.ne.s32.totalorder %s48_s15, %s2768_s19  ;;  %p2774_p2 = scmp.lt.s32.totalorder %s2768_s19, %s2768_s19 }
   0x5   :  { %p2775_p3 = por %p2774_p2, %p2773_p1 }
   0x7   :  { %p2776_p4 = pnand %p2775_p3, %p2769_p0 }
   0x9   :  { %2779 = shalt.err (!%p2776_p4)
}
   0xa   :  { %s2808_s20 = smov [#allocation4]   ;;  %s2780_s21 = scalar_lea.vmem %s38_s18, 16 }
   0xb   :  { %50 = dma.vmem_to_smem %s48_s15, 16, %s2808_s20, [#allocation5]  }
   0xc   :  { %p2781_p5 = scmp.ne.s32.totalorder %s38_s18, %s2780_s21  ;;  %p2785_p6 = scmp.lt.s32.totalorder %s38_s18, %s38_s18 }
   0xd   :  { %p2786_p7 = scmp.lt.s32.totalorder %s2780_s21, %s2780_s21 }
   0xf   :  { %p2787_p8 = por %p2786_p7, %p2785_p6 }
  0x11   :  { %p2788_p9 = pnand %p2787_p8, %p2781_p5 }
  0x13   :  { %2791 = shalt.err (!%p2788_p9)
}
  0x14   :  { %s2809_s8 = smov [#allocation2]   ;;  %s57_s23 = sshll.u32 %s3404_s9, 4  ;;  %s58_s23 = int_to_ptr.vmem [resolvable:$true] %s57_s23 }
  0x15   :  { %40 = dma.vmem_to_smem %s38_s18, 16, %s2809_s8, [#allocation3]  }
  0x16   :  { %s2792_s24 = scalar_lea.vmem %s58_s23, 16  ;;  %p2797_p11 = scmp.lt.s32.totalorder %s58_s23, %s58_s23 }
  0x17   :  { %p2793_p10 = scmp.ne.s32.totalorder %s58_s23, %s2792_s24  ;;  %p2798_p12 = scmp.lt.s32.totalorder %s2792_s24, %s2792_s24 }
  0x19   :  { %p2799_p13 = por %p2798_p12, %p2797_p11 }
  0x1b   :  { %p2800_p0 = pnand %p2799_p13, %p2793_p10 }
  0x1d   :  { %2803 = shalt.err (!%p2800_p0)
}
  0x1e   :  { %s2810_s25 = smov [#allocation6]  }
  0x1f   :  { %60 = dma.vmem_to_smem %s58_s23, 16, %s2810_s25, [#allocation5]  }
  0x20   :  { %2804 = dma.done.wait [#allocation3], 16  }
  0x21   :  { %2805 = vsyncadd [#allocation3], 4294967280 }
  0x22   :  { %2806 = dma.done.wait [#allocation5], 32  }
  0x23   :  { %2807 = vsyncadd [#allocation5], 4294967264 }
  0x24   :  { %70 = sfence }
  0x25   :  { %v71_v0 = vld [vmem:[%s3397_s2] sm:$0xff]  ;;  %v72_v1 = vld [vmem:[%s3397_s2 + $0x8] sm:$0xff]  ;;  %vm109_vm0 = vcmask 130048   ;;  %v2919_v10 = vld [vmem:[%s3400_s5 + $0x10] sm:$0xff]  ;;  %vm211_vm5 = vcmask 523264   ;;  %s102_s22 = sld [smem:[#allocation4]] }
  0x26   :  { %v2884_v2 = vld [vmem:[%s3400_s5] sm:$0xff]  ;;  %v2886_v3 = vpack.c.bf16 %v72_v1, %v71_v0  ;;  %v2900_v6 = vld [vmem:[%s3400_s5 + $0x8] sm:$0xff]  ;;  %vm87_vm3 = vcmp.gt.f32.partialorder %v2919_v10, 0.5  ;;  %v2928_v11 = vld [vmem:[%s3401_s6 + $0x10] sm:$0xff]  ;;  %s103_s23 = sld [smem:[#allocation6]]  ;;  %s2025_s11 = sld [smem:[#allocation2 + $0x1]] }
  0x27   :  { %vm85_vm1 = vcmp.gt.f32.partialorder %v2884_v2, 0.5  ;;  %v2892_v4 = vld [vmem:[%s3401_s6] sm:$0xff]  ;;  %vm86_vm2 = vcmp.gt.f32.partialorder %v2900_v6, 0.5  ;;  %v2911_v8 = vld [vmem:[%s3401_s6 + $0x8] sm:$0xff]  ;;  %v95_v12 = vld [vmem:[%s3395_s0 + $0x10] sm:$0xff]  ;;  %s2026_s12 = sld [smem:[#allocation4 + $0x1]] }
  0x28   :  { %v93_v5 = vld [vmem:[%s3395_s0] sm:$0xff]  ;;  %v94_v9 = vld [vmem:[%s3395_s0 + $0x8] sm:$0xff]  ;;  %2538 = vmatprep.subr.bf16.mxu1 %v2886_v3  ;;  %v2936_v13 = vld [vmem:[%s3400_s5 + $0x18] sm:$0xff]  ;;  %2558 = vmatprep.subr.bf16.mxu0 %v2886_v3  ;;  %v2948_v15 = vsel %vm87_vm3, %v2928_v11, %v95_v12  ;;  %s2027_s13 = sld [smem:[#allocation6 + $0x1]]  ;;  %s2041_s7 = sld [smem:[#allocation2 + $0x2]] }
  0x29   :  { %v2905_v7 = vsel %vm85_vm1, %v2892_v4, %v93_v5  ;;  %2540 = vmatpush3.bf16.msra.mxu1 %v2886_v3  ;;  %v2942_v14 = vsel %vm86_vm2, %v2911_v8, %v94_v9  ;;  %vm88_vm4 = vcmp.gt.f32.partialorder %v2936_v13, 0.5  ;;  %v2954_v16 = vld [vmem:[%s3401_s6 + $0x18] sm:$0xff]  ;;  %2560 = vmatpush3.bf16.msra.mxu0 %v2886_v3  ;;  %v73_v19 = vld [vmem:[%s3398_s3] sm:$0xff]  ;;  %v74_v20 = vld [vmem:[%s3398_s3 + $0x8] sm:$0xff]  ;;  %s2057_s30 = sld [smem:[#allocation2 + $0x3]]  ;;  %s2073_s8 = sld [smem:[#allocation2 + $0x4]] }
  0x2a   :  { %2285 = vmatprep.mubr.msk.f32.mxu1 %vm109_vm0, %v2905_v7  ;;  %v96_v17 = vld [vmem:[%s3395_s0 + $0x18] sm:$0xff]  ;;  %v2977_v21 = vpack.c.bf16 %v74_v20, %v73_v19  ;;  %v75_v22 = vld [vmem:[%s3398_s3 + $0x10] sm:$0xff]  ;;  %v77_v25 = vld [vmem:[%s3398_s3 + $0x20] sm:$0xff]  ;;  %s2089_s0 = sld [smem:[#allocation2 + $0x5]]  ;;  %s2105_s21 = sld [smem:[#allocation2 + $0x6]] }
  0x2b   :  { %v2967_v18 = vsel %vm88_vm4, %v2954_v16, %v96_v17  ;;  %v76_v23 = vld [vmem:[%s3398_s3 + $0x18] sm:$0xff]  ;;  %v78_v26 = vld [vmem:[%s3398_s3 + $0x28] sm:$0xff]  ;;  %v79_v28 = vld [vmem:[%s3398_s3 + $0x30] sm:$0xff]  ;;  %v314_v45 = vstv %s102_s22  ;;  %s2043_s22 = sld [smem:[#allocation6 + $0x2]]  ;;  %s2123_s15 = sld [smem:[#allocation6 + $0x7]] }
  0x2c   :  { %2286 = vmatmul.mubr.msk.f32.vlgmr.msra.gmra.mrb[0].mxu1 %vm109_vm0, %v2942_v14  ;;  %2542 = vmatprep.subr.bf16.mxu1 %v2977_v21  ;;  %v2988_v24 = vpack.c.bf16 %v76_v23, %v75_v22  ;;  %v2998_v27 = vpack.c.bf16 %v78_v26, %v77_v25  ;;  %v80_v29 = vld [vmem:[%s3398_s3 + $0x38] sm:$0xff]  ;;  %v2016_v31 = vld [vmem:[%s3399_s4] ss:$0 sm:$0xff]  ;;  %s101_s3 = sld [smem:[#allocation2]]  ;;  %v324_v46 = vld [vmem:[%s3396_s1 + $0x8] sm:$0xff]  ;;  %v327_v47 = vstv %s103_s23 }
  0x2d   :  { %2288 = vmatprep.mubr.msk.f32.mxu1 %vm109_vm0, %v2948_v15  ;;  %2562 = vmatprep.subr.bf16.mxu0 %v2977_v21  ;;  %v3008_v30 = vpack.c.bf16 %v80_v29, %v79_v28  ;;  %v323_v49 = vld [vmem:[%s3396_s1] sm:$0xff]  ;;  %v329_v53 = vmul.f32 %v327_v47, %v324_v46  ;;  %v326_v57 = vld [vmem:[%s3396_s1 + $0x18] sm:$0xff]  ;;  %v325_v60 = vld [vmem:[%s3396_s1 + $0x10] sm:$0xff] }
  0x2e   :  { %2544 = vmatpush3.bf16.msra.mxu1 %v2977_v21  ;;  %v328_v56 = vmul.f32 %v327_v47, %v323_v49  ;;  %v331_v5 = vmul.f32 %v327_v47, %v326_v57  ;;  %v2028_v26 = vld [vmem:[%s3399_s4 + $0x1] ss:$0 sm:$0xff] }
  0x2f   :  { %2546 = vmatprep.subr.bf16.mxu1 %v2988_v24 }
  0x30   :  { %2289 = vmatmul.mubr.msk.f32.gmra.mrb[2].mxu1 %vm109_vm0, %v2967_v18 }
  0x32   :  { %2548 = vmatpush3.bf16.msra.mxu1 %v2988_v24  ;;  %v309_v44 = vstv %s101_s3  ;;  %s2042_s3 = sld [smem:[#allocation4 + $0x2]] }
  0x33   :  { %2550 = vmatprep.subr.bf16.mxu1 %v2998_v27  ;;  %v311_v48 = vmul.f32 %v309_v44, %v2942_v14  ;;  %v310_v50 = vmul.f32 %v309_v44, %v2905_v7  ;;  %v313_v59 = vmul.f32 %v309_v44, %v2967_v18  ;;  %v312_v63 = vmul.f32 %v309_v44, %v2948_v15 }
  0x34   :  { %v330_v14 = vmul.f32 %v327_v47, %v325_v60  ;;  %v565_v44 = vstv %s2027_s13 }
  0x36   :  { %2552 = vmatpush3.bf16.msra.mxu1 %v2998_v27 }
  0x37   :  { %2554 = vmatprep.subr.bf16.mxu1 %v3008_v30 }
  0x3a   :  { %2556 = vmatpush3.bf16.msra.mxu1 %v3008_v30 }
  0x3b   :  { %2578 = vmatprep.subr.bf16.mxu1 %v2886_v3 }
  0xff   :  { %v2287_v32 = vpop.f32.mrb[0].mxu1 }
 0x100   :  { %v194_v33 = vadd.f32 %v2287_v32, %v2016_v31  ;;  %v188_v34 = vpop.f32.mrb[1].mxu1 }
 0x101   :  { %v189_v35 = vadd.f32 %v2016_v31, %v188_v34 }
 0x103   :  { %2700 = vtanh.f32 %v189_v35  ;;  %v2290_v36 = vpop.f32.mrb[2].mxu1 }
 0x104   :  { %2702 = vtanh.f32 %v194_v33  ;;  %v204_v37 = vadd.f32 %v2290_v36, %v2016_v31  ;;  %v198_v38 = vpop.f32.mrb[3].mxu1 }
 0x105   :  { %v199_v39 = vadd.f32 %v2016_v31, %v198_v38 }
 0x107   :  { %2704 = vtanh.f32 %v199_v39 }
 0x108   :  { %2706 = vtanh.f32 %v204_v37 }
 0x10d   :  { %v2701_v40 = vpop.eup %2700 }
 0x10e   :  { %v2703_v41 = vpop.eup %2702  ;;  %2307 = vmatprep.mubr.msk.f32.mxu1 %vm211_vm5, %v2701_v40 }
 0x10f   :  { %2308 = vmatmul.mubr.msk.f32.vlgmr.msra.gmra.mrb[4].mxu1 %vm211_vm5, %v2703_v41  ;;  %v546_v41 = vstv %s2025_s11  ;;  %s2058_s11 = sld [smem:[#allocation4 + $0x3]] }
 0x110   :  { %2580 = vmatpush3.bf16.msra.mxu1 %v2886_v3 }
 0x111   :  { %v2705_v42 = vpop.eup %2704  ;;  %2582 = vmatprep.subr.bf16.mxu1 %v2977_v21 }
 0x112   :  { %v2707_v43 = vpop.eup %2706  ;;  %2310 = vmatprep.mubr.msk.f32.mxu1 %vm211_vm5, %v2705_v42  ;;  %v551_v42 = vstv %s2026_s12  ;;  %s2059_s12 = sld [smem:[#allocation6 + $0x3]] }
 0x113   :  { %2311 = vmatmul.mubr.msk.f32.gmra.mrb[6].mxu1 %vm211_vm5, %v2707_v43  ;;  %v2038_v43 = vld [vmem:[%s3396_s1 + $0x28] sm:$0xff] }
 0x114   :  { %v567_v49 = vmul.f32 %v2038_v43, %v565_v44 }
 0x1e2   :  { %v2309_v51 = vpop.f32.mrb[4].mxu1 }
 0x1e3   :  { %v316_v52 = vmul.f32 %v2309_v51, %v314_v45  ;;  %v290_v54 = vpop.f32.mrb[5].mxu1 }
 0x1e4   :  { %v315_v55 = vmul.f32 %v314_v45, %v290_v54  ;;  %v2040_v54 = vld [vmem:[%s3396_s1 + $0x38] sm:$0xff] }
 0x1e5   :  { %v320_v58 = vsub.f32 %v311_v48, %v316_v52 }
 0x1e6   :  { %v319_v61 = vsub.f32 %v310_v50, %v315_v55  ;;  %v2312_v62 = vpop.f32.mrb[6].mxu1 }
 0x1e7   :  { %v333_v0 = vadd.f32 %v329_v53, %v320_v58  ;;  %v318_v1 = vmul.f32 %v2312_v62, %v314_v45  ;;  %v300_v7 = vpop.f32.mrb[7].mxu1  ;;  %v569_v62 = vmul.f32 %v2040_v54, %v565_v44 }
 0x1e8   :  { %v332_v9 = vadd.f32 %v328_v56, %v319_v61  ;;  %v317_v12 = vmul.f32 %v314_v45, %v300_v7  ;;  %v2037_v45 = vld [vmem:[%s3396_s1 + $0x20] sm:$0xff]  ;;  %v2039_v56 = vld [vmem:[%s3396_s1 + $0x30] sm:$0xff] }
 0x1e9   :  { %v322_v17 = vsub.f32 %v313_v59, %v318_v1  ;;  %v337_v15 = vsel %vm86_vm2, %v2911_v8, %v333_v0  ;;  %v566_v53 = vmul.f32 %v2037_v45, %v565_v44  ;;  %v568_v7 = vmul.f32 %v2039_v56, %v565_v44 }
 0x1ea   :  { %v321_v19 = vsub.f32 %v312_v63, %v317_v12  ;;  %v336_v18 = vsel %vm85_vm1, %v2892_v4, %v332_v9  ;;  %v548_v47 = vmul.f32 %v546_v41, %v337_v15 }
 0x1eb   :  { %v335_v20 = vadd.f32 %v331_v5, %v322_v17  ;;  %2317 = vmatprep.mubr.msk.f32.mxu0 %vm109_vm0, %v336_v18  ;;  %v547_v51 = vmul.f32 %v546_v41, %v336_v18 }
 0x1ec   :  { %v334_v22 = vadd.f32 %v330_v14, %v321_v19  ;;  %2318 = vmatmul.mubr.msk.f32.vlgmr.msra.gmra.mrb[0].mxu0 %vm109_vm0, %v337_v15 }
 0x1ed   :  { %2564 = vmatpush3.bf16.msra.mxu0 %v2977_v21  ;;  %v339_v25 = vsel %vm88_vm4, %v2954_v16, %v335_v20 }
 0x1ee   :  { %v338_v23 = vsel %vm87_vm3, %v2928_v11, %v334_v22  ;;  %2566 = vmatprep.subr.bf16.mxu0 %v2988_v24  ;;  %v550_v60 = vmul.f32 %v546_v41, %v339_v25  ;;  %v2044_v22 = vld [vmem:[%s3399_s4 + $0x2] ss:$0 sm:$0xff] }
 0x1ef   :  { %2320 = vmatprep.mubr.msk.f32.mxu0 %vm109_vm0, %v338_v23  ;;  %v549_v1 = vmul.f32 %v546_v41, %v338_v23  ;;  %v803_v41 = vstv %s2043_s22 }
 0x1f0   :  { %2321 = vmatmul.mubr.msk.f32.gmra.mrb[2].mxu0 %vm109_vm0, %v339_v25 }
 0x1f1   :  { %2568 = vmatpush3.bf16.msra.mxu0 %v2988_v24 }
 0x1f2   :  { %2570 = vmatprep.subr.bf16.mxu0 %v2998_v27 }
 0x1f5   :  { %2572 = vmatpush3.bf16.msra.mxu0 %v2998_v27 }
 0x1f6   :  { %2574 = vmatprep.subr.bf16.mxu0 %v3008_v30 }
 0x1f9   :  { %2576 = vmatpush3.bf16.msra.mxu0 %v3008_v30 }
 0x1fa   :  { %2598 = vmatprep.subr.bf16.mxu0 %v2886_v3 }
 0x2bf   :  { %v2319_v28 = vpop.f32.mrb[0].mxu0 }
 0x2c0   :  { %v432_v29 = vadd.f32 %v2319_v28, %v2028_v26  ;;  %v426_v31 = vpop.f32.mrb[1].mxu0 }
 0x2c1   :  { %v427_v32 = vadd.f32 %v2028_v26, %v426_v31 }
 0x2c3   :  { %2708 = vtanh.f32 %v427_v32  ;;  %v2322_v33 = vpop.f32.mrb[2].mxu0 }
 0x2c4   :  { %2710 = vtanh.f32 %v432_v29  ;;  %v442_v34 = vadd.f32 %v2322_v33, %v2028_v26  ;;  %v436_v35 = vpop.f32.mrb[3].mxu0 }
 0x2c5   :  { %v437_v36 = vadd.f32 %v2028_v26, %v436_v35 }
 0x2c7   :  { %2712 = vtanh.f32 %v437_v36 }
 0x2c8   :  { %2714 = vtanh.f32 %v442_v34 }
 0x2cd   :  { %v2709_v37 = vpop.eup %2708 }
 0x2ce   :  { %v2711_v38 = vpop.eup %2710  ;;  %2339 = vmatprep.mubr.msk.f32.mxu0 %vm211_vm5, %v2709_v37 }
 0x2cf   :  { %2340 = vmatmul.mubr.msk.f32.vlgmr.msra.gmra.mrb[4].mxu0 %vm211_vm5, %v2711_v38  ;;  %v784_v38 = vstv %s2041_s7  ;;  %s2074_s7 = sld [smem:[#allocation4 + $0x4]] }
 0x2d0   :  { %2600 = vmatpush3.bf16.msra.mxu0 %v2886_v3 }
 0x2d1   :  { %v2713_v39 = vpop.eup %2712  ;;  %2602 = vmatprep.subr.bf16.mxu0 %v2977_v21 }
 0x2d2   :  { %v2715_v40 = vpop.eup %2714  ;;  %2342 = vmatprep.mubr.msk.f32.mxu0 %vm211_vm5, %v2713_v39  ;;  %v789_v39 = vstv %s2042_s3  ;;  %s2075_s3 = sld [smem:[#allocation6 + $0x4]] }
 0x2d3   :  { %2343 = vmatmul.mubr.msk.f32.gmra.mrb[6].mxu0 %vm211_vm5, %v2715_v40  ;;  %v2054_v40 = vld [vmem:[%s3396_s1 + $0x48] sm:$0xff] }
 0x3a2   :  { %v2341_v46 = vpop.f32.mrb[4].mxu0 }
 0x3a3   :  { %v553_v48 = vmul.f32 %v2341_v46, %v551_v42  ;;  %v527_v50 = vpop.f32.mrb[5].mxu0  ;;  %v805_v46 = vmul.f32 %v2054_v40, %v803_v41 }
 0x3a4   :  { %v552_v52 = vmul.f32 %v551_v42, %v527_v50 }
 0x3a5   :  { %v557_v55 = vsub.f32 %v548_v47, %v553_v48 }
 0x3a6   :  { %v556_v57 = vsub.f32 %v547_v51, %v552_v52  ;;  %v2344_v58 = vpop.f32.mrb[6].mxu0  ;;  %v2056_v51 = vld [vmem:[%s3396_s1 + $0x58] sm:$0xff] }
 0x3a7   :  { %v571_v59 = vadd.f32 %v567_v49, %v557_v55  ;;  %v555_v61 = vmul.f32 %v2344_v58, %v551_v42  ;;  %v537_v63 = vpop.f32.mrb[7].mxu0 }
 0x3a8   :  { %v570_v0 = vadd.f32 %v566_v53, %v556_v57  ;;  %v554_v5 = vmul.f32 %v551_v42, %v537_v63  ;;  %v2053_v42 = vld [vmem:[%s3396_s1 + $0x40] sm:$0xff]  ;;  %v2055_v53 = vld [vmem:[%s3396_s1 + $0x50] sm:$0xff] }
 0x3a9   :  { %v559_v9 = vsub.f32 %v550_v60, %v555_v61  ;;  %v575_v19 = vsel %vm86_vm2, %v2911_v8, %v571_v59  ;;  %v804_v50 = vmul.f32 %v2053_v42, %v803_v41  ;;  %v807_v59 = vmul.f32 %v2056_v51, %v803_v41 }
 0x3aa   :  { %v558_v12 = vsub.f32 %v549_v1, %v554_v5  ;;  %v574_v14 = vsel %vm85_vm1, %v2892_v4, %v570_v0  ;;  %v786_v44 = vmul.f32 %v784_v38, %v575_v19  ;;  %v806_v0 = vmul.f32 %v2055_v53, %v803_v41 }
 0x3ab   :  { %v573_v17 = vadd.f32 %v569_v62, %v559_v9  ;;  %2349 = vmatprep.mubr.msk.f32.mxu1 %vm109_vm0, %v574_v14  ;;  %v785_v48 = vmul.f32 %v784_v38, %v574_v14 }
 0x3ac   :  { %v572_v18 = vadd.f32 %v568_v7, %v558_v12  ;;  %2350 = vmatmul.mubr.msk.f32.vlgmr.msra.gmra.mrb[8].mxu1 %vm109_vm0, %v575_v19 }
 0x3ad   :  { %2584 = vmatpush3.bf16.msra.mxu1 %v2977_v21  ;;  %v577_v15 = vsel %vm88_vm4, %v2954_v16, %v573_v17 }
 0x3ae   :  { %v576_v20 = vsel %vm87_vm3, %v2928_v11, %v572_v18  ;;  %2586 = vmatprep.subr.bf16.mxu1 %v2988_v24  ;;  %v788_v57 = vmul.f32 %v784_v38, %v577_v15  ;;  %v2060_v18 = vld [vmem:[%s3399_s4 + $0x3] ss:$0 sm:$0xff] }
 0x3af   :  { %2352 = vmatprep.mubr.msk.f32.mxu1 %vm109_vm0, %v576_v20  ;;  %v787_v62 = vmul.f32 %v784_v38, %v576_v20  ;;  %v1041_v38 = vstv %s2059_s12 }
 0x3b0   :  { %2353 = vmatmul.mubr.msk.f32.gmra.mrb[10].mxu1 %vm109_vm0, %v577_v15 }
 0x3b1   :  { %2588 = vmatpush3.bf16.msra.mxu1 %v2988_v24 }
 0x3b2   :  { %2590 = vmatprep.subr.bf16.mxu1 %v2998_v27 }
 0x3b5   :  { %2592 = vmatpush3.bf16.msra.mxu1 %v2998_v27 }
 0x3b6   :  { %2594 = vmatprep.subr.bf16.mxu1 %v3008_v30 }
 0x3b9   :  { %2596 = vmatpush3.bf16.msra.mxu1 %v3008_v30 }
 0x3ba   :  { %2618 = vmatprep.subr.bf16.mxu1 %v2886_v3 }
 0x47f   :  { %v2351_v23 = vpop.f32.mrb[8].mxu1 }
 0x480   :  { %v670_v25 = vadd.f32 %v2351_v23, %v2044_v22  ;;  %v664_v26 = vpop.f32.mrb[9].mxu1 }
 0x481   :  { %v665_v28 = vadd.f32 %v2044_v22, %v664_v26 }
 0x483   :  { %2716 = vtanh.f32 %v665_v28  ;;  %v2354_v29 = vpop.f32.mrb[10].mxu1 }
 0x484   :  { %2718 = vtanh.f32 %v670_v25  ;;  %v680_v31 = vadd.f32 %v2354_v29, %v2044_v22  ;;  %v674_v32 = vpop.f32.mrb[11].mxu1 }
 0x485   :  { %v675_v33 = vadd.f32 %v2044_v22, %v674_v32 }
 0x487   :  { %2720 = vtanh.f32 %v675_v33 }
 0x488   :  { %2722 = vtanh.f32 %v680_v31 }
 0x48d   :  { %v2717_v34 = vpop.eup %2716 }
 0x48e   :  { %v2719_v35 = vpop.eup %2718  ;;  %2371 = vmatprep.mubr.msk.f32.mxu1 %vm211_vm5, %v2717_v34 }
 0x48f   :  { %2372 = vmatmul.mubr.msk.f32.vlgmr.msra.gmra.mrb[12].mxu1 %vm211_vm5, %v2719_v35  ;;  %v1022_v35 = vstv %s2057_s30  ;;  %s2090_s30 = sld [smem:[#allocation4 + $0x5]] }
 0x490   :  { %2620 = vmatpush3.bf16.msra.mxu1 %v2886_v3 }
 0x491   :  { %v2721_v36 = vpop.eup %2720  ;;  %2622 = vmatprep.subr.bf16.mxu1 %v2977_v21 }
 0x492   :  { %v2723_v37 = vpop.eup %2722  ;;  %2374 = vmatprep.mubr.msk.f32.mxu1 %vm211_vm5, %v2721_v36  ;;  %v1027_v36 = vstv %s2058_s11  ;;  %s2091_s11 = sld [smem:[#allocation6 + $0x5]] }
 0x493   :  { %2375 = vmatmul.mubr.msk.f32.gmra.mrb[14].mxu1 %vm211_vm5, %v2723_v37  ;;  %v2070_v37 = vld [vmem:[%s3396_s1 + $0x68] sm:$0xff] }
 0x562   :  { %v2373_v43 = vpop.f32.mrb[12].mxu1 }
 0x563   :  { %v791_v45 = vmul.f32 %v2373_v43, %v789_v39  ;;  %v765_v47 = vpop.f32.mrb[13].mxu1  ;;  %v1043_v43 = vmul.f32 %v2070_v37, %v1041_v38 }
 0x564   :  { %v790_v49 = vmul.f32 %v789_v39, %v765_v47 }
 0x565   :  { %v795_v52 = vsub.f32 %v786_v44, %v791_v45 }
 0x566   :  { %v794_v54 = vsub.f32 %v785_v48, %v790_v49  ;;  %v2376_v55 = vpop.f32.mrb[14].mxu1  ;;  %v2072_v48 = vld [vmem:[%s3396_s1 + $0x78] sm:$0xff] }
 0x567   :  { %v809_v56 = vadd.f32 %v805_v46, %v795_v52  ;;  %v793_v58 = vmul.f32 %v2376_v55, %v789_v39  ;;  %v775_v60 = vpop.f32.mrb[15].mxu1 }
 0x568   :  { %v808_v61 = vadd.f32 %v804_v50, %v794_v54  ;;  %v792_v63 = vmul.f32 %v789_v39, %v775_v60  ;;  %v2069_v39 = vld [vmem:[%s3396_s1 + $0x60] sm:$0xff]  ;;  %v2071_v50 = vld [vmem:[%s3396_s1 + $0x70] sm:$0xff] }
 0x569   :  { %v797_v1 = vsub.f32 %v788_v57, %v793_v58  ;;  %v813_v12 = vsel %vm86_vm2, %v2911_v8, %v809_v56  ;;  %v1042_v47 = vmul.f32 %v2069_v39, %v1041_v38  ;;  %v1045_v56 = vmul.f32 %v2072_v48, %v1041_v38 }
 0x56a   :  { %v796_v5 = vsub.f32 %v787_v62, %v792_v63  ;;  %v812_v7 = vsel %vm85_vm1, %v2892_v4, %v808_v61  ;;  %v1024_v41 = vmul.f32 %v1022_v35, %v813_v12  ;;  %v1044_v61 = vmul.f32 %v2071_v50, %v1041_v38 }
 0x56b   :  { %v811_v9 = vadd.f32 %v807_v59, %v797_v1  ;;  %2381 = vmatprep.mubr.msk.f32.mxu0 %vm109_vm0, %v812_v7  ;;  %v1023_v45 = vmul.f32 %v1022_v35, %v812_v7 }
 0x56c   :  { %v810_v14 = vadd.f32 %v806_v0, %v796_v5  ;;  %2382 = vmatmul.mubr.msk.f32.vlgmr.msra.gmra.mrb[8].mxu0 %vm109_vm0, %v813_v12 }
 0x56d   :  { %2604 = vmatpush3.bf16.msra.mxu0 %v2977_v21  ;;  %v815_v19 = vsel %vm88_vm4, %v2954_v16, %v811_v9 }
 0x56e   :  { %v814_v17 = vsel %vm87_vm3, %v2928_v11, %v810_v14  ;;  %2606 = vmatprep.subr.bf16.mxu0 %v2988_v24  ;;  %v1026_v54 = vmul.f32 %v1022_v35, %v815_v19  ;;  %v2076_v14 = vld [vmem:[%s3399_s4 + $0x4] ss:$0 sm:$0xff] }
 0x56f   :  { %2384 = vmatprep.mubr.msk.f32.mxu0 %vm109_vm0, %v814_v17  ;;  %v1025_v59 = vmul.f32 %v1022_v35, %v814_v17  ;;  %v1279_v35 = vstv %s2075_s3 }
 0x570   :  { %2385 = vmatmul.mubr.msk.f32.gmra.mrb[10].mxu0 %vm109_vm0, %v815_v19 }
 0x571   :  { %2608 = vmatpush3.bf16.msra.mxu0 %v2988_v24 }
 0x572   :  { %2610 = vmatprep.subr.bf16.mxu0 %v2998_v27 }
 0x575   :  { %2612 = vmatpush3.bf16.msra.mxu0 %v2998_v27 }
 0x576   :  { %2614 = vmatprep.subr.bf16.mxu0 %v3008_v30 }
 0x579   :  { %2616 = vmatpush3.bf16.msra.mxu0 %v3008_v30 }
 0x57a   :  { %2638 = vmatprep.subr.bf16.mxu0 %v2886_v3 }
 0x63f   :  { %v2383_v20 = vpop.f32.mrb[8].mxu0 }
 0x640   :  { %v908_v15 = vadd.f32 %v2383_v20, %v2060_v18  ;;  %v902_v22 = vpop.f32.mrb[9].mxu0 }
 0x641   :  { %v903_v23 = vadd.f32 %v2060_v18, %v902_v22 }
 0x643   :  { %2724 = vtanh.f32 %v903_v23  ;;  %v2386_v25 = vpop.f32.mrb[10].mxu0 }
 0x644   :  { %2726 = vtanh.f32 %v908_v15  ;;  %v918_v26 = vadd.f32 %v2386_v25, %v2060_v18  ;;  %v912_v28 = vpop.f32.mrb[11].mxu0 }
 0x645   :  { %v913_v29 = vadd.f32 %v2060_v18, %v912_v28 }
 0x647   :  { %2728 = vtanh.f32 %v913_v29 }
 0x648   :  { %2730 = vtanh.f32 %v918_v26 }
 0x64d   :  { %v2725_v31 = vpop.eup %2724 }
 0x64e   :  { %v2727_v32 = vpop.eup %2726  ;;  %2403 = vmatprep.mubr.msk.f32.mxu0 %vm211_vm5, %v2725_v31 }
 0x64f   :  { %2404 = vmatmul.mubr.msk.f32.vlgmr.msra.gmra.mrb[12].mxu0 %vm211_vm5, %v2727_v32  ;;  %v1260_v32 = vstv %s2073_s8  ;;  %s2106_s8 = sld [smem:[#allocation4 + $0x6]] }
 0x650   :  { %2640 = vmatpush3.bf16.msra.mxu0 %v2886_v3 }
 0x651   :  { %v2729_v33 = vpop.eup %2728  ;;  %2642 = vmatprep.subr.bf16.mxu0 %v2977_v21 }
 0x652   :  { %v2731_v34 = vpop.eup %2730  ;;  %2406 = vmatprep.mubr.msk.f32.mxu0 %vm211_vm5, %v2729_v33  ;;  %v1265_v33 = vstv %s2074_s7  ;;  %s2107_s7 = sld [smem:[#allocation6 + $0x6]] }
 0x653   :  { %2407 = vmatmul.mubr.msk.f32.gmra.mrb[14].mxu0 %vm211_vm5, %v2731_v34  ;;  %v2086_v34 = vld [vmem:[%s3396_s1 + $0x88] sm:$0xff] }
 0x722   :  { %v2405_v40 = vpop.f32.mrb[12].mxu0 }
 0x723   :  { %v1029_v42 = vmul.f32 %v2405_v40, %v1027_v36  ;;  %v1003_v44 = vpop.f32.mrb[13].mxu0  ;;  %v1281_v40 = vmul.f32 %v2086_v34, %v1279_v35 }
 0x724   :  { %v1028_v46 = vmul.f32 %v1027_v36, %v1003_v44 }
 0x725   :  { %v1033_v49 = vsub.f32 %v1024_v41, %v1029_v42 }
 0x726   :  { %v1032_v51 = vsub.f32 %v1023_v45, %v1028_v46  ;;  %v2408_v52 = vpop.f32.mrb[14].mxu0  ;;  %v2088_v45 = vld [vmem:[%s3396_s1 + $0x98] sm:$0xff] }
 0x727   :  { %v1047_v53 = vadd.f32 %v1043_v43, %v1033_v49  ;;  %v1031_v55 = vmul.f32 %v2408_v52, %v1027_v36  ;;  %v1013_v57 = vpop.f32.mrb[15].mxu0 }
 0x728   :  { %v1046_v58 = vadd.f32 %v1042_v47, %v1032_v51  ;;  %v1030_v60 = vmul.f32 %v1027_v36, %v1013_v57  ;;  %v2085_v36 = vld [vmem:[%s3396_s1 + $0x80] sm:$0xff]  ;;  %v2087_v47 = vld [vmem:[%s3396_s1 + $0x90] sm:$0xff] }
 0x729   :  { %v1035_v62 = vsub.f32 %v1026_v54, %v1031_v55  ;;  %v1051_v5 = vsel %vm86_vm2, %v2911_v8, %v1047_v53  ;;  %v1280_v44 = vmul.f32 %v2085_v36, %v1279_v35  ;;  %v1283_v53 = vmul.f32 %v2088_v45, %v1279_v35 }
 0x72a   :  { %v1034_v63 = vsub.f32 %v1025_v59, %v1030_v60  ;;  %v1050_v0 = vsel %vm85_vm1, %v2892_v4, %v1046_v58  ;;  %v1262_v38 = vmul.f32 %v1260_v32, %v1051_v5  ;;  %v1282_v58 = vmul.f32 %v2087_v47, %v1279_v35 }
 0x72b   :  { %v1049_v1 = vadd.f32 %v1045_v56, %v1035_v62  ;;  %2413 = vmatprep.mubr.msk.f32.mxu1 %vm109_vm0, %v1050_v0  ;;  %v1261_v42 = vmul.f32 %v1260_v32, %v1050_v0 }
 0x72c   :  { %v1048_v7 = vadd.f32 %v1044_v61, %v1034_v63  ;;  %2414 = vmatmul.mubr.msk.f32.vlgmr.msra.gmra.mrb[16].mxu1 %vm109_vm0, %v1051_v5 }
 0x72d   :  { %2624 = vmatpush3.bf16.msra.mxu1 %v2977_v21  ;;  %v1053_v12 = vsel %vm88_vm4, %v2954_v16, %v1049_v1 }
 0x72e   :  { %v1052_v9 = vsel %vm87_vm3, %v2928_v11, %v1048_v7  ;;  %2626 = vmatprep.subr.bf16.mxu1 %v2988_v24  ;;  %v1264_v51 = vmul.f32 %v1260_v32, %v1053_v12  ;;  %v2092_v7 = vld [vmem:[%s3399_s4 + $0x5] ss:$0 sm:$0xff] }
 0x72f   :  { %2416 = vmatprep.mubr.msk.f32.mxu1 %vm109_vm0, %v1052_v9  ;;  %v1263_v56 = vmul.f32 %v1260_v32, %v1052_v9  ;;  %v1517_v32 = vstv %s2091_s11 }
 0x730   :  { %2417 = vmatmul.mubr.msk.f32.gmra.mrb[18].mxu1 %vm109_vm0, %v1053_v12 }
 0x731   :  { %2628 = vmatpush3.bf16.msra.mxu1 %v2988_v24 }
 0x732   :  { %2630 = vmatprep.subr.bf16.mxu1 %v2998_v27 }
 0x735   :  { %2632 = vmatpush3.bf16.msra.mxu1 %v2998_v27 }
 0x736   :  { %2634 = vmatprep.subr.bf16.mxu1 %v3008_v30 }
 0x739   :  { %2636 = vmatpush3.bf16.msra.mxu1 %v3008_v30 }
 0x73a   :  { %2658 = vmatprep.subr.bf16.mxu1 %v2886_v3 }
 0x7ff   :  { %v2415_v17 = vpop.f32.mrb[16].mxu1 }
 0x800   :  { %v1146_v19 = vadd.f32 %v2415_v17, %v2076_v14  ;;  %v1140_v18 = vpop.f32.mrb[17].mxu1 }
 0x801   :  { %v1141_v20 = vadd.f32 %v2076_v14, %v1140_v18 }
 0x803   :  { %2732 = vtanh.f32 %v1141_v20  ;;  %v2418_v15 = vpop.f32.mrb[18].mxu1 }
 0x804   :  { %2734 = vtanh.f32 %v1146_v19  ;;  %v1156_v22 = vadd.f32 %v2418_v15, %v2076_v14  ;;  %v1150_v23 = vpop.f32.mrb[19].mxu1 }
 0x805   :  { %v1151_v25 = vadd.f32 %v2076_v14, %v1150_v23 }
 0x807   :  { %2736 = vtanh.f32 %v1151_v25 }
 0x808   :  { %2738 = vtanh.f32 %v1156_v22 }
 0x80d   :  { %v2733_v26 = vpop.eup %2732 }
 0x80e   :  { %v2735_v28 = vpop.eup %2734  ;;  %2435 = vmatprep.mubr.msk.f32.mxu1 %vm211_vm5, %v2733_v26 }
 0x80f   :  { %2436 = vmatmul.mubr.msk.f32.vlgmr.msra.gmra.mrb[20].mxu1 %vm211_vm5, %v2735_v28  ;;  %v1498_v28 = vstv %s2089_s0 }
 0x810   :  { %2660 = vmatpush3.bf16.msra.mxu1 %v2886_v3 }
 0x811   :  { %v2737_v29 = vpop.eup %2736  ;;  %2662 = vmatprep.subr.bf16.mxu1 %v2977_v21 }
 0x812   :  { %v2739_v31 = vpop.eup %2738  ;;  %2438 = vmatprep.mubr.msk.f32.mxu1 %vm211_vm5, %v2737_v29  ;;  %v1503_v29 = vstv %s2090_s30 }
 0x813   :  { %2439 = vmatmul.mubr.msk.f32.gmra.mrb[22].mxu1 %vm211_vm5, %v2739_v31  ;;  %v2102_v31 = vld [vmem:[%s3396_s1 + $0xa8] sm:$0xff] }
 0x814   :  { %v1519_v36 = vmul.f32 %v2102_v31, %v1517_v32 }
 0x8e2   :  { %v2437_v37 = vpop.f32.mrb[20].mxu1 }
 0x8e3   :  { %v1267_v39 = vmul.f32 %v2437_v37, %v1265_v33  ;;  %v1241_v41 = vpop.f32.mrb[21].mxu1 }
 0x8e4   :  { %v1266_v43 = vmul.f32 %v1265_v33, %v1241_v41  ;;  %v2104_v41 = vld [vmem:[%s3396_s1 + $0xb8] sm:$0xff] }
 0x8e5   :  { %v1271_v46 = vsub.f32 %v1262_v38, %v1267_v39 }
 0x8e6   :  { %v1270_v48 = vsub.f32 %v1261_v42, %v1266_v43  ;;  %v2440_v49 = vpop.f32.mrb[22].mxu1  ;;  %v2103_v43 = vld [vmem:[%s3396_s1 + $0xb0] sm:$0xff] }
 0x8e7   :  { %v1285_v50 = vadd.f32 %v1281_v40, %v1271_v46  ;;  %v1269_v52 = vmul.f32 %v2440_v49, %v1265_v33  ;;  %v1251_v54 = vpop.f32.mrb[23].mxu1  ;;  %v1521_v49 = vmul.f32 %v2104_v41, %v1517_v32 }
 0x8e8   :  { %v1284_v55 = vadd.f32 %v1280_v44, %v1270_v48  ;;  %v1268_v57 = vmul.f32 %v1265_v33, %v1251_v54  ;;  %v1520_v54 = vmul.f32 %v2103_v43, %v1517_v32 }
 0x8e9   :  { %v1273_v59 = vsub.f32 %v1264_v51, %v1269_v52  ;;  %v1289_v63 = vsel %vm86_vm2, %v2911_v8, %v1285_v50 }
 0x8ea   :  { %v1272_v60 = vsub.f32 %v1263_v56, %v1268_v57  ;;  %v1288_v61 = vsel %vm85_vm1, %v2892_v4, %v1284_v55  ;;  %v1500_v34 = vmul.f32 %v1498_v28, %v1289_v63 }
 0x8eb   :  { %v1287_v62 = vadd.f32 %v1283_v53, %v1273_v59  ;;  %2445 = vmatprep.mubr.msk.f32.mxu0 %vm109_vm0, %v1288_v61  ;;  %v1499_v38 = vmul.f32 %v1498_v28, %v1288_v61 }
 0x8ec   :  { %v1286_v0 = vadd.f32 %v1282_v58, %v1272_v60  ;;  %2446 = vmatmul.mubr.msk.f32.vlgmr.msra.gmra.mrb[16].mxu0 %vm109_vm0, %v1289_v63 }
 0x8ed   :  { %2644 = vmatpush3.bf16.msra.mxu0 %v2977_v21  ;;  %v1291_v5 = vsel %vm88_vm4, %v2954_v16, %v1287_v62 }
 0x8ee   :  { %v1290_v1 = vsel %vm87_vm3, %v2928_v11, %v1286_v0  ;;  %2646 = vmatprep.subr.bf16.mxu0 %v2988_v24  ;;  %v1502_v47 = vmul.f32 %v1498_v28, %v1291_v5 }
 0x8ef   :  { %2448 = vmatprep.mubr.msk.f32.mxu0 %vm109_vm0, %v1290_v1  ;;  %v1501_v52 = vmul.f32 %v1498_v28, %v1290_v1 }
 0x8f0   :  { %2449 = vmatmul.mubr.msk.f32.gmra.mrb[18].mxu0 %vm109_vm0, %v1291_v5 }
 0x8f1   :  { %2648 = vmatpush3.bf16.msra.mxu0 %v2988_v24 }
 0x8f2   :  { %2650 = vmatprep.subr.bf16.mxu0 %v2998_v27 }
 0x8f5   :  { %2652 = vmatpush3.bf16.msra.mxu0 %v2998_v27 }
 0x8f6   :  { %2654 = vmatprep.subr.bf16.mxu0 %v3008_v30 }
 0x8f9   :  { %2656 = vmatpush3.bf16.msra.mxu0 %v3008_v30 }
 0x8fa   :  { %2678 = vmatprep.subr.bf16.mxu0 %v2886_v3 }
 0x9bf   :  { %v2447_v9 = vpop.f32.mrb[16].mxu0 }
 0x9c0   :  { %v1384_v12 = vadd.f32 %v2447_v9, %v2092_v7  ;;  %v1378_v14 = vpop.f32.mrb[17].mxu0 }
 0x9c1   :  { %v1379_v17 = vadd.f32 %v2092_v7, %v1378_v14 }
 0x9c3   :  { %2740 = vtanh.f32 %v1379_v17  ;;  %v2450_v19 = vpop.f32.mrb[18].mxu0 }
 0x9c4   :  { %2742 = vtanh.f32 %v1384_v12  ;;  %v1394_v18 = vadd.f32 %v2450_v19, %v2092_v7  ;;  %v1388_v20 = vpop.f32.mrb[19].mxu0  ;;  %v1736_v19 = vstv %s2105_s21 }
 0x9c5   :  { %v1389_v15 = vadd.f32 %v2092_v7, %v1388_v20  ;;  %v2118_v20 = vld [vmem:[%s3396_s1 + $0xc8] sm:$0xff] }
 0x9c7   :  { %2744 = vtanh.f32 %v1389_v15  ;;  %v1755_v15 = vstv %s2107_s7 }
 0x9c8   :  { %2746 = vtanh.f32 %v1394_v18  ;;  %v1741_v18 = vstv %s2106_s8  ;;  %v1757_v28 = vmul.f32 %v2118_v20, %v1755_v15 }
 0x9cd   :  { %v2741_v22 = vpop.eup %2740 }
 0x9ce   :  { %v2743_v23 = vpop.eup %2742  ;;  %2467 = vmatprep.mubr.msk.f32.mxu0 %vm211_vm5, %v2741_v22  ;;  %v2117_v22 = vld [vmem:[%s3396_s1 + $0xc0] sm:$0xff] }
 0x9cf   :  { %2468 = vmatmul.mubr.msk.f32.vlgmr.msra.gmra.mrb[20].mxu0 %vm211_vm5, %v2743_v23 }
 0x9d0   :  { %2680 = vmatpush3.bf16.msra.mxu0 %v2886_v3  ;;  %v2101_v3 = vld [vmem:[%s3396_s1 + $0xa0] sm:$0xff] }
 0x9d1   :  { %v2745_v25 = vpop.eup %2744  ;;  %2682 = vmatprep.subr.bf16.mxu0 %v2977_v21  ;;  %v1518_v40 = vmul.f32 %v2101_v3, %v1517_v32  ;;  %v1756_v3 = vmul.f32 %v2117_v22, %v1755_v15 }
 0x9d2   :  { %v2747_v26 = vpop.eup %2746  ;;  %2470 = vmatprep.mubr.msk.f32.mxu0 %vm211_vm5, %v2745_v25 }
 0x9d3   :  { %2471 = vmatmul.mubr.msk.f32.gmra.mrb[22].mxu0 %vm211_vm5, %v2747_v26 }
 0xaa2   :  { %v2469_v33 = vpop.f32.mrb[20].mxu0 }
 0xaa3   :  { %v1505_v35 = vmul.f32 %v2469_v33, %v1503_v29  ;;  %v1479_v37 = vpop.f32.mrb[21].mxu0  ;;  %v2120_v33 = vld [vmem:[%s3396_s1 + $0xd8] sm:$0xff] }
 0xaa4   :  { %v1504_v39 = vmul.f32 %v1503_v29, %v1479_v37  ;;  %v1759_v41 = vmul.f32 %v2120_v33, %v1755_v15 }
 0xaa5   :  { %v1509_v42 = vsub.f32 %v1500_v34, %v1505_v35  ;;  %v2119_v35 = vld [vmem:[%s3396_s1 + $0xd0] sm:$0xff] }
 0xaa6   :  { %v1508_v44 = vsub.f32 %v1499_v38, %v1504_v39  ;;  %v2472_v45 = vpop.f32.mrb[22].mxu0 }
 0xaa7   :  { %v1523_v46 = vadd.f32 %v1519_v36, %v1509_v42  ;;  %v1507_v48 = vmul.f32 %v2472_v45, %v1503_v29  ;;  %v1489_v50 = vpop.f32.mrb[23].mxu0 }
 0xaa8   :  { %v1522_v51 = vadd.f32 %v1518_v40, %v1508_v44  ;;  %v1506_v53 = vmul.f32 %v1503_v29, %v1489_v50 }
 0xaa9   :  { %v1511_v55 = vsub.f32 %v1502_v47, %v1507_v48  ;;  %v1527_v59 = vsel %vm86_vm2, %v2911_v8, %v1523_v46  ;;  %v2108_v8 = vld [vmem:[%s3399_s4 + $0x6] ss:$0 sm:$0xff]  ;;  %v1758_v46 = vmul.f32 %v2119_v35, %v1755_v15 }
 0xaaa   :  { %v1510_v56 = vsub.f32 %v1501_v52, %v1506_v53  ;;  %v1526_v57 = vsel %vm85_vm1, %v2892_v4, %v1522_v51  ;;  %v1738_v25 = vmul.f32 %v1736_v19, %v1527_v59  ;;  %v3317_v52 = vld [vmem:[%s3401_s6 + $0x8] sm:$0xff] }
 0xaab   :  { %v1525_v58 = vadd.f32 %v1521_v49, %v1511_v55  ;;  %2477 = vmatprep.mubr.msk.f32.mxu1 %vm109_vm0, %v1526_v57  ;;  %v1737_v31 = vmul.f32 %v1736_v19, %v1526_v57  ;;  %v3308_v49 = vld [vmem:[%s3401_s6] sm:$0xff]  ;;  %v3327_v55 = vld [vmem:[%s3401_s6 + $0x10] sm:$0xff]  ;;  %v3337_v57 = vld [vmem:[%s3401_s6 + $0x18] sm:$0xff]  ;;  %s2122_s6 = sld [smem:[#allocation4 + $0x7]] }
 0xaac   :  { %v1524_v60 = vadd.f32 %v1520_v54, %v1510_v56  ;;  %2478 = vmatmul.mubr.msk.f32.vlgmr.msra.gmra.mrb[24].mxu1 %vm109_vm0, %v1527_v59 }
 0xaad   :  { %2664 = vmatpush3.bf16.msra.mxu1 %v2977_v21  ;;  %v1529_v4 = vsel %vm88_vm4, %v2954_v16, %v1525_v58  ;;  %v2124_v58 = vld [vmem:[%s3399_s4 + $0x7] ss:$0 sm:$0xff]  ;;  %s2121_s4 = sld [smem:[#allocation2 + $0x7]] }
 0xaae   :  { %v1528_v61 = vsel %vm87_vm3, %v2928_v11, %v1524_v60  ;;  %2666 = vmatprep.subr.bf16.mxu1 %v2988_v24  ;;  %v1740_v39 = vmul.f32 %v1736_v19, %v1529_v4 }
 0xaaf   :  { %2480 = vmatprep.mubr.msk.f32.mxu1 %vm109_vm0, %v1528_v61  ;;  %v1739_v44 = vmul.f32 %v1736_v19, %v1528_v61 }
 0xab0   :  { %2481 = vmatmul.mubr.msk.f32.gmra.mrb[26].mxu1 %vm109_vm0, %v1529_v4 }
 0xab1   :  { %2668 = vmatpush3.bf16.msra.mxu1 %v2988_v24 }
 0xab2   :  { %2670 = vmatprep.subr.bf16.mxu1 %v2998_v27 }
 0xab5   :  { %2672 = vmatpush3.bf16.msra.mxu1 %v2998_v27 }
 0xab6   :  { %2674 = vmatprep.subr.bf16.mxu1 %v3008_v30 }
 0xab9   :  { %2676 = vmatpush3.bf16.msra.mxu1 %v3008_v30 }
 0xb7f   :  { %v2479_v11 = vpop.f32.mrb[24].mxu1 }
 0xb80   :  { %v1622_v62 = vadd.f32 %v2479_v11, %v2108_v8  ;;  %v1616_v63 = vpop.f32.mrb[25].mxu1 }
 0xb81   :  { %v1617_v16 = vadd.f32 %v2108_v8, %v1616_v63 }
 0xb83   :  { %2748 = vtanh.f32 %v1617_v16  ;;  %v2482_v0 = vpop.f32.mrb[26].mxu1 }
 0xb84   :  { %2750 = vtanh.f32 %v1622_v62  ;;  %v1632_v1 = vadd.f32 %v2482_v0, %v2108_v8  ;;  %v1626_v5 = vpop.f32.mrb[27].mxu1  ;;  %v1974_v0 = vstv %s2121_s4 }
 0xb85   :  { %v1627_v7 = vadd.f32 %v2108_v8, %v1626_v5  ;;  %v2134_v5 = vld [vmem:[%s3396_s1 + $0xe8] sm:$0xff] }
 0xb87   :  { %2752 = vtanh.f32 %v1627_v7  ;;  %v1993_v7 = vstv %s2123_s15 }
 0xb88   :  { %2754 = vtanh.f32 %v1632_v1  ;;  %v1979_v1 = vstv %s2122_s6  ;;  %v1995_v19 = vmul.f32 %v2134_v5, %v1993_v7 }
 0xb8d   :  { %v2749_v9 = vpop.eup %2748 }
 0xb8e   :  { %v2751_v12 = vpop.eup %2750  ;;  %2499 = vmatprep.mubr.msk.f32.mxu1 %vm211_vm5, %v2749_v9  ;;  %v2133_v9 = vld [vmem:[%s3396_s1 + $0xe0] sm:$0xff] }
 0xb8f   :  { %2500 = vmatmul.mubr.msk.f32.vlgmr.msra.gmra.mrb[28].mxu1 %vm211_vm5, %v2751_v12  ;;  %v1994_v22 = vmul.f32 %v2133_v9, %v1993_v7 }
 0xb91   :  { %v2753_v14 = vpop.eup %2752 }
 0xb92   :  { %v2755_v17 = vpop.eup %2754  ;;  %2502 = vmatprep.mubr.msk.f32.mxu1 %vm211_vm5, %v2753_v14 }
 0xb93   :  { %2503 = vmatmul.mubr.msk.f32.gmra.mrb[30].mxu1 %vm211_vm5, %v2755_v17 }
 0xc62   :  { %v2501_v23 = vpop.f32.mrb[28].mxu1 }
 0xc63   :  { %v1743_v26 = vmul.f32 %v2501_v23, %v1741_v18  ;;  %v1717_v29 = vpop.f32.mrb[29].mxu1  ;;  %v2136_v23 = vld [vmem:[%s3396_s1 + $0xf8] sm:$0xff] }
 0xc64   :  { %v1742_v32 = vmul.f32 %v1741_v18, %v1717_v29  ;;  %v1997_v33 = vmul.f32 %v2136_v23, %v1993_v7 }
 0xc65   :  { %v1747_v34 = vsub.f32 %v1738_v25, %v1743_v26  ;;  %v2135_v26 = vld [vmem:[%s3396_s1 + $0xf0] sm:$0xff] }
 0xc66   :  { %v1746_v36 = vsub.f32 %v1737_v31, %v1742_v32  ;;  %v2504_v37 = vpop.f32.mrb[30].mxu1 }
 0xc67   :  { %v1761_v38 = vadd.f32 %v1757_v28, %v1747_v34  ;;  %v1745_v40 = vmul.f32 %v2504_v37, %v1741_v18  ;;  %v1727_v42 = vpop.f32.mrb[31].mxu1 }
 0xc68   :  { %v1760_v43 = vadd.f32 %v1756_v3, %v1746_v36  ;;  %v1744_v45 = vmul.f32 %v1741_v18, %v1727_v42 }
 0xc69   :  { %v1749_v47 = vsub.f32 %v1740_v39, %v1745_v40  ;;  %v1765_v53 = vsel %vm86_vm2, %v3317_v52, %v1761_v38  ;;  %v1996_v38 = vmul.f32 %v2135_v26, %v1993_v7 }
 0xc6a   :  { %v1748_v48 = vsub.f32 %v1739_v44, %v1744_v45  ;;  %v1764_v50 = vsel %vm85_vm1, %v3308_v49, %v1760_v43  ;;  %v1976_v14 = vmul.f32 %v1974_v0, %v1765_v53 }
 0xc6b   :  { %v1763_v51 = vadd.f32 %v1759_v41, %v1749_v47  ;;  %2509 = vmatprep.mubr.msk.f32.mxu0 %vm109_vm0, %v1764_v50  ;;  %v1975_v20 = vmul.f32 %v1974_v0, %v1764_v50 }
 0xc6c   :  { %v1762_v54 = vadd.f32 %v1758_v46, %v1748_v48  ;;  %2510 = vmatmul.mubr.msk.f32.vlgmr.msra.gmra.mrb[24].mxu0 %vm109_vm0, %v1765_v53 }
 0xc6d   :  { %2684 = vmatpush3.bf16.msra.mxu0 %v2977_v21  ;;  %v1767_v21 = vsel %vm88_vm4, %v3337_v57, %v1763_v51 }
 0xc6e   :  { %v1766_v56 = vsel %vm87_vm3, %v3327_v55, %v1762_v54  ;;  %2686 = vmatprep.subr.bf16.mxu0 %v2988_v24  ;;  %v1978_v32 = vmul.f32 %v1974_v0, %v1767_v21 }
 0xc6f   :  { %2512 = vmatprep.mubr.msk.f32.mxu0 %vm109_vm0, %v1766_v56  ;;  %v1977_v36 = vmul.f32 %v1974_v0, %v1766_v56 }
 0xc70   :  { %2513 = vmatmul.mubr.msk.f32.gmra.mrb[26].mxu0 %vm109_vm0, %v1767_v21 }
 0xc71   :  { %2688 = vmatpush3.bf16.msra.mxu0 %v2988_v24 }
 0xc72   :  { %2690 = vmatprep.subr.bf16.mxu0 %v2998_v27 }
 0xc75   :  { %2692 = vmatpush3.bf16.msra.mxu0 %v2998_v27 }
 0xc76   :  { %2694 = vmatprep.subr.bf16.mxu0 %v3008_v30 }
 0xc79   :  { %2696 = vmatpush3.bf16.msra.mxu0 %v3008_v30 }
 0xd3f   :  { %v2511_v59 = vpop.f32.mrb[24].mxu0 }
 0xd40   :  { %v1860_v60 = vadd.f32 %v2511_v59, %v2124_v58  ;;  %v1854_v61 = vpop.f32.mrb[25].mxu0 }
 0xd41   :  { %v1855_v4 = vadd.f32 %v2124_v58, %v1854_v61 }
 0xd43   :  { %2756 = vtanh.f32 %v1855_v4  ;;  %v2514_v8 = vpop.f32.mrb[26].mxu0 }
 0xd44   :  { %2758 = vtanh.f32 %v1860_v60  ;;  %v1870_v24 = vadd.f32 %v2514_v8, %v2124_v58  ;;  %v1864_v11 = vpop.f32.mrb[27].mxu0 }
 0xd45   :  { %v1865_v62 = vadd.f32 %v2124_v58, %v1864_v11 }
 0xd47   :  { %2760 = vtanh.f32 %v1865_v62 }
 0xd48   :  { %2762 = vtanh.f32 %v1870_v24 }
 0xd4d   :  { %v2757_v27 = vpop.eup %2756 }
 0xd4e   :  { %v2759_v63 = vpop.eup %2758  ;;  %2531 = vmatprep.mubr.msk.f32.mxu0 %vm211_vm5, %v2757_v27 }
 0xd4f   :  { %2532 = vmatmul.mubr.msk.f32.vlgmr.msra.gmra.mrb[28].mxu0 %vm211_vm5, %v2759_v63 }
 0xd51   :  { %v2761_v30 = vpop.eup %2760 }
 0xd52   :  { %v2763_v16 = vpop.eup %2762  ;;  %2534 = vmatprep.mubr.msk.f32.mxu0 %vm211_vm5, %v2761_v30 }
 0xd53   :  { %2535 = vmatmul.mubr.msk.f32.gmra.mrb[30].mxu0 %vm211_vm5, %v2763_v16 }
 0xe22   :  { %v2533_v12 = vpop.f32.mrb[28].mxu0 }
 0xe23   :  { %v1981_v17 = vmul.f32 %v2533_v12, %v1979_v1  ;;  %v1955_v18 = vpop.f32.mrb[29].mxu0 }
 0xe24   :  { %v1980_v15 = vmul.f32 %v1979_v1, %v1955_v18 }
 0xe25   :  { %v1985_v25 = vsub.f32 %v1976_v14, %v1981_v17 }
 0xe26   :  { %v1984_v28 = vsub.f32 %v1975_v20, %v1980_v15  ;;  %v2536_v29 = vpop.f32.mrb[30].mxu0 }
 0xe27   :  { %v1999_v31 = vadd.f32 %v1995_v19, %v1985_v25  ;;  %v1983_v3 = vmul.f32 %v2536_v29, %v1979_v1  ;;  %v1965_v34 = vpop.f32.mrb[31].mxu0 }
 0xe28   :  { %v1998_v35 = vadd.f32 %v1994_v22, %v1984_v28  ;;  %v1982_v37 = vmul.f32 %v1979_v1, %v1965_v34 }
 0xe29   :  { %v2003_v39 = vsel %vm86_vm2, %v3317_v52, %v1999_v31  ;;  %v1987_v40 = vsub.f32 %v1978_v32, %v1983_v3 }
 0xe2a   :  { %2007 = vst.msk [vmem:[%s3405_s10 + $0x8] sm:$0xff] %vm109_vm0, %v2003_v39  ;;  %v2002_v41 = vsel %vm85_vm1, %v3308_v49, %v1998_v35  ;;  %v1986_v42 = vsub.f32 %v1977_v36, %v1982_v37 }
 0xe2b   :  { %2006 = vst.msk [vmem:[%s3405_s10] sm:$0xff] %vm109_vm0, %v2002_v41  ;;  %v2001_v43 = vadd.f32 %v1997_v33, %v1987_v40 }
 0xe2c   :  { %v2000_v44 = vadd.f32 %v1996_v38, %v1986_v42 }
 0xe2d   :  { %v2005_v6 = vsel %vm88_vm4, %v3337_v57, %v2001_v43 }
 0xe2e   :  { %2009 = vst.msk [vmem:[%s3405_s10 + $0x18] sm:$0xff] %vm109_vm0, %v2005_v6  ;;  %v2004_v2 = vsel %vm87_vm3, %v3327_v55, %v2000_v44 }
 0xe2f   :  { %2008 = vst.msk [vmem:[%s3405_s10 + $0x10] sm:$0xff] %vm109_vm0, %v2004_v2 }
 0xe30   :  { %2014 = vsyncpa [#allocation3], 1 }
 0xe31   :  { %2015 = vsyncpa [#allocation5], 1 }

</bundles_post_ra>
